<compile_context>
chip_gen: v5e
topology: v5e:2x2
jax: 0.10.0
libtpu: 0.0.40
codegen_flags: <defaults>
</compile_context>

<pallas_src>
import functools
import math

import numpy as np
import jax
import jax.numpy as jnp
from jax import lax
from jax.experimental import pallas as pl
from jax.experimental.pallas import tpu as pltpu


# ----------------------------------------------------------------------------
# Pallas kernel: fused QKV proj + per-head attention + fused output proj
# ----------------------------------------------------------------------------
def window_attn_kernel(x_ref, bpm_ref, wqkv_ref, bqkv_ref, wp_ref, bp_ref,
                       o_ref, *, num_heads):
    """One grid step = w_blk windows.

    x_ref    : (w_blk, Np, C)   bf16 window tokens
    bpm_ref  : (H, MB, Np, Np)  bf16 rel-pos bias (+ shift mask), MB in {1, w_blk}
    wqkv_ref : (C, 3C)          bf16, attention scale pre-folded into Q columns
    bqkv_ref : (1, 3C)          f32  (scale pre-folded into the Q part)
    wp_ref   : (C, C)           bf16
    bp_ref   : (1, C)           f32
    o_ref    : (w_blk, Np, C)
    """
    wb, n, c = x_ref.shape
    h = num_heads
    hd = c // h
    r = wb * n

    # ---- fused QKV projection: one (r, C) @ (C, 3C) MXU pass ---------------
    x = x_ref[...].reshape(r, c)                       # free: Np % 8 == 0
    qkv = jnp.dot(x, wqkv_ref[...], preferred_element_type=jnp.float32)
    qkv = (qkv + bqkv_ref[...]).astype(jnp.bfloat16)   # (r, 3C)
    qkv = qkv.reshape(wb, n, 3 * c)                    # free leading split

    # ---- per-head attention --------------------------------------------------
    # The contraction depth of the attention matmuls is hd by definition, so a
    # static per-head loop costs no MXU utilization relative to a batched form;
    # it only replaces a lane<->sublane relayout with cheap static lane slices.
    ctx_parts = []
    for head in range(h):
        q = qkv[:, :, 0 * c + head * hd: 0 * c + (head + 1) * hd]  # (wb, n, hd)
        k = qkv[:, :, 1 * c + head * hd: 1 * c + (head + 1) * hd]
        v = qkv[:, :, 2 * c + head * hd: 2 * c + (head + 1) * hd]

        # s[w, i, j] = sum_d q[w, i, d] * k[w, j, d]     (scale already folded)
        s = lax.dot_general(q, k, (((2,), (2,)), ((0,), (0,))),
                            preferred_element_type=jnp.float32)    # (wb, n, n)
        s = s + bpm_ref[head].astype(jnp.float32)       # (MB, n, n) broadcasts

        # softmax (f32 math; reciprocal on the EUP slot)
        s = s - jnp.max(s, axis=-1, keepdims=True)
        p = jnp.exp(s)
        p = p * pl.reciprocal(jnp.sum(p, axis=-1, keepdims=True), approx=True)
        p = p.astype(jnp.bfloat16)

        ctx_parts.append(
            lax.dot_general(p, v, (((2,), (1,)), ((0,), (0,))),
                            preferred_element_type=jnp.float32)
            .astype(jnp.bfloat16))                                  # (wb, n, hd)

    # merge heads along lanes -> (r, C); the head-sum of the output projection
    # is fused into the full C-deep contraction below.
    ctx = jnp.concatenate(ctx_parts, axis=-1).reshape(r, c)

    # ---- output projection: one (r, C) @ (C, C) MXU pass --------------------
    y = jnp.dot(ctx, wp_ref[...], preferred_element_type=jnp.float32)
    y = y + bp_ref[...]
    o_ref[...] = y.reshape(wb, n, c).astype(o_ref.dtype)


# ----------------------------------------------------------------------------
# Wrapper
# ----------------------------------------------------------------------------
def _pick_window_block(nw, cap):
    """Largest divisor of nw that is <= cap."""
    cap = max(1, min(cap, nw))
    best = 1
    for d in range(1, cap + 1):
        if nw % d == 0:
            best = d
    return best


def _vmem_window_cap(n, c, h, has_mask, out_itemsize, budget_bytes):
    """Rough per-window VMEM cost; keeps the block choice safe on v7x (64 MiB)."""
    fixed = 2 * 2 * (3 * c * c + c * c)                 # bf16 wqkv+wproj, 2 buffers
    per_win = (
        2 * 2 * n * c                                   # x block (bf16) x2 buffers
        + 2 * out_itemsize * n * c                      # out block x2 buffers
        + (2 * 2 * h * n * n if has_mask else 0)        # bias block (bf16) x2
        + (4 + 2) * 3 * n * c                           # qkv f32 + bf16 copy
        + 4 * 2 * h * n * n                             # scores + probs (f32)
        + (4 + 2) * n * c                               # ctx (f32 + bf16)
        + 4 * n * c                                     # y (f32)
    )
    return max(1, int((budget_bytes - fixed) // per_win))


def window_attention(x, mask, rpb_table, rel_idx, wqkv, bqkv, wproj, bproj,
                     num_heads, max_windows_per_block=16,
                     vmem_budget_bytes=40 * 1024 * 1024):
    """Pallas WindowAttention forward.

    x        : (num_windows*B, N, C) ordered batch-major (row = b*nW + w)
    mask     : (nW, N, N) 0/-100 shift mask, or None
    rpb_table: ((2*ws-1)^2, H)
    rel_idx  : (N, N) int index into rpb_table
    wqkv     : (C, 3C)  (= torch qkv.weight.T), bqkv: (3C,)
    wproj    : (C, C)   (= torch proj.weight.T), bproj: (C,)
    """
    bw, n, c = x.shape
    if c % num_heads:
        raise ValueError(f"dim {c} not divisible by num_heads {num_heads}")
    hd = c // num_heads
    scale = math.sqrt(1.0 / hd)
    out_dtype = x.dtype
    cdt = jnp.bfloat16                      # MXU-native compute dtype

    # ---- weights: fold the attention scale into Wq / bq, cast to bf16 ------
    wqkv_f = jnp.concatenate([wqkv[:, :c] * scale, wqkv[:, c:]],
                             axis=1).astype(cdt)                    # (C, 3C)
    bqkv_f = jnp.concatenate([bqkv[:c] * scale, bqkv[c:]])
    bqkv_f = bqkv_f.reshape(1, 3 * c).astype(jnp.float32)           # (1, 3C)
    wp = wproj.astype(cdt)                                          # (C, C)
    bp = bproj.reshape(1, c).astype(jnp.float32)                    # (1, C)

    # ---- relative-position bias, combined ONCE with the shift mask ---------
    bias = rpb_table[jnp.asarray(rel_idx).reshape(-1)].reshape(n, n, num_heads)
    bias = jnp.transpose(bias, (2, 0, 1)).astype(jnp.float32)       # (H, N, N)
    if mask is not None:
        nw = mask.shape[0]
        assert bw % nw == 0, "rows of x must be ordered (batch, window) batch-major"
        batch = bw // nw
        bias_pm = bias[:, None] + mask[None].astype(jnp.float32)    # (H, nW, N, N)
    else:
        nw, batch = bw, 1
        bias_pm = bias[:, None]                                     # (H, 1, N, N)

    # ---- pad N to a sublane multiple (ws=7 -> N=49 -> 56) ------------------
    n_pad = -(-n // 8) * 8
    pad = n_pad - n
    x_in = x.astype(cdt)
    if pad:
        x_in = jnp.pad(x_in, ((0, 0), (0, pad), (0, 0)))
        # padded key columns are never attended; padded query rows are sliced off
        bias_pm = jnp.pad(bias_pm, ((0, 0), (0, 0), (0, pad), (0, pad)),
                          constant_values=-1e9)
    bias_pm = bias_pm.astype(cdt)

    # ---- choose windows-per-step from the VMEM budget -----------------------
    cap = min(max_windows_per_block,
              _vmem_window_cap(n_pad, c, num_heads, mask is not None,
                               jnp.dtype(out_dtype).itemsize, vmem_budget_bytes))
    w_blk = _pick_window_block(nw, cap)
    # v7x megacore: make sure there are at least 2 grid steps.
    while batch * (nw // w_blk) < 2 and w_blk > 1:
        w_blk = _pick_window_block(nw, w_blk - 1)
    blocks_per_image = nw // w_blk

    # Grid is (window-block, batch) with batch INNERMOST: the bias block index
    # depends only on the outer axis, so Pallas skips the per-image re-DMA of
    # the identical bias(+mask) block.
    xo_map = lambda i, b, bpi=blocks_per_image: (b * bpi + i, 0, 0)
    const2 = lambda i, b: (0, 0)
    if mask is not None:
        bpm_spec = pl.BlockSpec((num_heads, w_blk, n_pad, n_pad),
                                lambda i, b: (0, i, 0, 0))
    else:
        bpm_spec = pl.BlockSpec((num_heads, 1, n_pad, n_pad),
                                lambda i, b: (0, 0, 0, 0))

    kernel = functools.partial(window_attn_kernel, num_heads=num_heads)

    out = pl.pallas_call(
        kernel,
        out_shape=jax.ShapeDtypeStruct((bw, n_pad, c), out_dtype),
        grid=(blocks_per_image, batch),
        in_specs=[
            pl.BlockSpec((w_blk, n_pad, c), xo_map),               # x
            bpm_spec,                                              # bias (+mask)
            pl.BlockSpec((c, 3 * c), const2),                      # wqkv (fused)
            pl.BlockSpec((1, 3 * c), const2),                      # bqkv
            pl.BlockSpec((c, c), const2),                          # wproj
            pl.BlockSpec((1, c), const2),                          # bproj
        ],
        out_specs=pl.BlockSpec((w_blk, n_pad, c), xo_map),
        compiler_params=pltpu.CompilerParams(
            dimension_semantics=("parallel", "parallel"),
            vmem_limit_bytes=48 * 1024 * 1024),
    )(x_in, bias_pm, wqkv_f, bqkv_f, wp, bp)

    return out[:, :n] if pad else out


# ----------------------------------------------------------------------------
# Helpers (relative position index, shift mask) + pure-JAX reference
# ----------------------------------------------------------------------------
def relative_position_index(ws):
    coords = np.stack(np.meshgrid(np.arange(ws), np.arange(ws), indexing="ij"))
    flat = coords.reshape(2, -1)
    rel = (flat[:, :, None] - flat[:, None, :]).transpose(1, 2, 0).astype(np.int64)
    rel[:, :, 0] += ws - 1
    rel[:, :, 1] += ws - 1
    rel[:, :, 0] *= 2 * ws - 1
    return rel.sum(-1)                                             # (N, N)


def make_shift_mask(hp, wp, ws, shift):
    img_mask = np.zeros((1, hp, wp, 1), dtype=np.float32)
    slices = (slice(0, -ws), slice(-ws, -shift), slice(-shift, None))
    cnt = 0
    for hs in slices:
        for wsl in slices:
            img_mask[:, hs, wsl, :] = cnt
            cnt += 1
    mw = img_mask.reshape(1, hp // ws, ws, wp // ws, ws, 1)
    mw = mw.transpose(0, 1, 3, 2, 4, 5).reshape(-1, ws * ws)
    attn_mask = mw[:, None, :] - mw[:, :, None]
    return np.where(attn_mask != 0, -100.0, 0.0).astype(np.float32)  # (nW,N,N)


def window_attention_ref(x, mask, rpb_table, rel_idx, wqkv, bqkv, wproj, bproj,
                         num_heads):
    b, n, c = x.shape
    hd = c // num_heads
    scale = math.sqrt(1.0 / hd)
    qkv = (x @ wqkv + bqkv).reshape(b, n, 3, num_heads, hd)
    qkv = jnp.transpose(qkv, (2, 0, 3, 1, 4))
    q, k, v = qkv[0] * scale, qkv[1], qkv[2]
    attn = jnp.einsum('bhnd,bhmd->bhnm', q, k)
    bias = rpb_table[jnp.asarray(rel_idx).reshape(-1)].reshape(n, n, num_heads)
    attn = attn + jnp.transpose(bias, (2, 0, 1))[None]
    if mask is not None:
        nw = mask.shape[0]
        attn = attn.reshape(b // nw, nw, num_heads, n, n) + mask[None, :, None]
        attn = attn.reshape(b, num_heads, n, n)
    attn = jax.nn.softmax(attn, axis=-1)
    out = jnp.einsum('bhnm,bhmd->bhnd', attn, v)
    out = jnp.transpose(out, (0, 2, 1, 3)).reshape(b, n, c)
    return out @ wproj + bproj


# ----------------------------------------------------------------------------
if __name__ == "__main__":
    # Small config consistent with the module: dim=32, heads=4, window=4 (N=16),
    # an 8x8 padded feature map -> nW=4 windows per image, batch B=2.
    B, WS, DIM, HEADS = 2, 4, 32, 4
    HP = WP = 8
    N = WS * WS
    NW = (HP // WS) * (WP // WS)
    BW = B * NW                                        # num_windows * B = 8

    key = jax.random.PRNGKey(0)
    kx, kq, kbq, kp, kbp, kt = jax.random.split(key, 6)
    x = jax.random.normal(kx, (BW, N, DIM), jnp.float32)
    wqkv = 0.02 * jax.random.normal(kq, (DIM, 3 * DIM), jnp.float32)
    bqkv = 0.02 * jax.random.normal(kbq, (3 * DIM,), jnp.float32)
    wproj = 0.02 * jax.random.normal(kp, (DIM, DIM), jnp.float32)
    bproj = 0.02 * jax.random.normal(kbp, (DIM,), jnp.float32)
    rpb_table = 0.02 * jax.random.normal(
        kt, ((2 * WS - 1) * (2 * WS - 1), HEADS), jnp.float32)

    rel_idx = relative_position_index(WS)
    mask = jnp.asarray(make_shift_mask(HP, WP, WS, WS // 2))        # (nW, N, N)

    # Shifted (masked) and non-shifted (mask=None) paths.
    out_masked = window_attention(x, mask, rpb_table, rel_idx, wqkv, bqkv,
                                  wproj, bproj, HEADS)
    out_plain = window_attention(x, None, rpb_table, rel_idx, wqkv, bqkv,
                                 wproj, bproj, HEADS)
    jax.block_until_ready((out_masked, out_plain))

    ref_masked = window_attention_ref(x, mask, rpb_table, rel_idx, wqkv, bqkv,
                                      wproj, bproj, HEADS)
    ref_plain = window_attention_ref(x, None, rpb_table, rel_idx, wqkv, bqkv,
                                     wproj, bproj, HEADS)
    # bf16 matmul operands (f32 accumulation) -> compare at bf16-level tolerance.
    np.testing.assert_allclose(np.asarray(out_masked), np.asarray(ref_masked),
                               rtol=1e-2, atol=2e-3)
    np.testing.assert_allclose(np.asarray(out_plain), np.asarray(ref_plain),
                               rtol=1e-2, atol=2e-3)

    assert out_masked.shape == (BW, N, DIM) and out_plain.shape == (BW, N, DIM)
    print("KERNEL_OK")
</pallas_src>

<mosaic_0001>
module attributes {stable_mosaic.version = 11 : i64} {
  func.func @window_attn_kernel(%arg0: i32, %arg1: i32, %arg2: memref<4x16x32xbf16, #tpu.memory_space<vmem>>, %arg3: memref<4x4x16x16xbf16, #tpu.memory_space<vmem>>, %arg4: memref<32x96xbf16, #tpu.memory_space<vmem>>, %arg5: memref<1x96xf32, #tpu.memory_space<vmem>>, %arg6: memref<32x32xbf16, #tpu.memory_space<vmem>>, %arg7: memref<1x32xf32, #tpu.memory_space<vmem>>, %arg8: memref<4x16x32xf32, #tpu.memory_space<vmem>>) attributes {dimension_semantics = [#tpu.dimension_semantics<parallel>, #tpu.dimension_semantics<parallel>], iteration_bounds = array<i64: 1, 2>, scalar_prefetch = 0 : i64, scratch_operands = 0 : i64, tpu.core_type = #tpu.core_type<tc>, window_params = [{transform_indices = @transform_0, window_bounds = array<i64: 4, 16, 32>}, {transform_indices = @transform_1, window_bounds = array<i64: 4, 4, 16, 16>}, {pipeline_mode = #tpu.pipeline_mode<synchronous>, transform_indices = @transform_2, window_bounds = array<i64: 32, 96>}, {pipeline_mode = #tpu.pipeline_mode<synchronous>, transform_indices = @transform_3, window_bounds = array<i64: 1, 96>}, {pipeline_mode = #tpu.pipeline_mode<synchronous>, transform_indices = @transform_4, window_bounds = array<i64: 32, 32>}, {pipeline_mode = #tpu.pipeline_mode<synchronous>, transform_indices = @transform_5, window_bounds = array<i64: 1, 32>}, {transform_indices = @transform_6, window_bounds = array<i64: 4, 16, 32>}]} {
    %c0 = arith.constant 0 : index
    %c0_0 = arith.constant 0 : index
    %c0_1 = arith.constant 0 : index
    %0 = vector.load %arg2[%c0, %c0_0, %c0_1] : memref<4x16x32xbf16, #tpu.memory_space<vmem>>, vector<4x16x32xbf16>
    %1 = vector.shape_cast %0 : vector<4x16x32xbf16> to vector<64x32xbf16>
    %c0_2 = arith.constant 0 : index
    %c0_3 = arith.constant 0 : index
    %2 = vector.load %arg4[%c0_2, %c0_3] : memref<32x96xbf16, #tpu.memory_space<vmem>>, vector<32x96xbf16>
    %cst = arith.constant dense<0.000000e+00> : vector<64x96xf32>
    %3 = tpu.matmul %1, %2, %cst {dimension_numbers = #tpu.dot_dimension_numbers<[1], [0], [0], [1], [0, 0, 1, 1], [], []>} : vector<64x32xbf16>, vector<32x96xbf16>, vector<64x96xf32> -> vector<64x96xf32>
    %c0_4 = arith.constant 0 : index
    %c0_5 = arith.constant 0 : index
    %4 = vector.load %arg5[%c0_4, %c0_5] : memref<1x96xf32, #tpu.memory_space<vmem>>, vector<1x96xf32>
    %5 = vector.broadcast %4 : vector<1x96xf32> to vector<64x96xf32>
    %6 = arith.addf %3, %5 : vector<64x96xf32>
    %7 = arith.truncf %6 : vector<64x96xf32> to vector<64x96xbf16>
    %8 = vector.shape_cast %7 : vector<64x96xbf16> to vector<4x16x96xbf16>
    %9 = vector.extract_strided_slice %8 {offsets = [0, 0, 0], sizes = [4, 16, 8], strides = [1, 1, 1]} : vector<4x16x96xbf16> to vector<4x16x8xbf16>
    %10 = vector.extract_strided_slice %8 {offsets = [0, 0, 32], sizes = [4, 16, 8], strides = [1, 1, 1]} : vector<4x16x96xbf16> to vector<4x16x8xbf16>
    %11 = vector.extract_strided_slice %8 {offsets = [0, 0, 64], sizes = [4, 16, 8], strides = [1, 1, 1]} : vector<4x16x96xbf16> to vector<4x16x8xbf16>
    %cst_6 = arith.constant dense<0.000000e+00> : vector<4x16x16xf32>
    %12 = tpu.matmul %9, %10, %cst_6 {dimension_numbers = #tpu.dot_dimension_numbers<[2], [2], [1], [1], [0, 0, 0, 1, 1, 1], [0], [0]>} : vector<4x16x8xbf16>, vector<4x16x8xbf16>, vector<4x16x16xf32> -> vector<4x16x16xf32>
    %c0_7 = arith.constant 0 : index
    %c0_8 = arith.constant 0 : index
    %c0_9 = arith.constant 0 : index
    %c0_10 = arith.constant 0 : index
    %13 = vector.load %arg3[%c0_7, %c0_8, %c0_9, %c0_10] : memref<4x4x16x16xbf16, #tpu.memory_space<vmem>>, vector<1x4x16x16xbf16>
    %14 = vector.shape_cast %13 : vector<1x4x16x16xbf16> to vector<4x16x16xbf16>
    %15 = arith.extf %14 : vector<4x16x16xbf16> to vector<4x16x16xf32>
    %16 = arith.addf %12, %15 : vector<4x16x16xf32>
    %cst_11 = arith.constant dense<0xFF800000> : vector<4x16xf32>
    %17 = vector.multi_reduction <maximumf>, %16, %cst_11 [2] : vector<4x16x16xf32> to vector<4x16xf32>
    %18 = vector.shape_cast %17 : vector<4x16xf32> to vector<4x16x1xf32>
    %19 = vector.broadcast %18 : vector<4x16x1xf32> to vector<4x16x16xf32>
    %20 = arith.subf %16, %19 : vector<4x16x16xf32>
    %21 = math.exp %20 : vector<4x16x16xf32>
    %cst_12 = arith.constant dense<0.000000e+00> : vector<4x16xf32>
    %22 = vector.multi_reduction <add>, %21, %cst_12 [2] : vector<4x16x16xf32> to vector<4x16xf32>
    %23 = vector.shape_cast %22 : vector<4x16xf32> to vector<4x16x1xf32>
    %24 = tpu.reciprocal %23 {approx = true} : vector<4x16x1xf32> -> vector<4x16x1xf32>
    %25 = vector.broadcast %24 : vector<4x16x1xf32> to vector<4x16x16xf32>
    %26 = arith.mulf %21, %25 : vector<4x16x16xf32>
    %27 = arith.truncf %26 : vector<4x16x16xf32> to vector<4x16x16xbf16>
    %cst_13 = arith.constant dense<0.000000e+00> : vector<4x16x8xf32>
    %28 = tpu.matmul %27, %11, %cst_13 {dimension_numbers = #tpu.dot_dimension_numbers<[2], [1], [1], [2], [0, 0, 0, 1, 1, 2], [0], [0]>} : vector<4x16x16xbf16>, vector<4x16x8xbf16>, vector<4x16x8xf32> -> vector<4x16x8xf32>
    %29 = arith.truncf %28 : vector<4x16x8xf32> to vector<4x16x8xbf16>
    %30 = vector.extract_strided_slice %8 {offsets = [0, 0, 8], sizes = [4, 16, 8], strides = [1, 1, 1]} : vector<4x16x96xbf16> to vector<4x16x8xbf16>
    %31 = vector.extract_strided_slice %8 {offsets = [0, 0, 40], sizes = [4, 16, 8], strides = [1, 1, 1]} : vector<4x16x96xbf16> to vector<4x16x8xbf16>
    %32 = vector.extract_strided_slice %8 {offsets = [0, 0, 72], sizes = [4, 16, 8], strides = [1, 1, 1]} : vector<4x16x96xbf16> to vector<4x16x8xbf16>
    %cst_14 = arith.constant dense<0.000000e+00> : vector<4x16x16xf32>
    %33 = tpu.matmul %30, %31, %cst_14 {dimension_numbers = #tpu.dot_dimension_numbers<[2], [2], [1], [1], [0, 0, 0, 1, 1, 1], [0], [0]>} : vector<4x16x8xbf16>, vector<4x16x8xbf16>, vector<4x16x16xf32> -> vector<4x16x16xf32>
    %c1 = arith.constant 1 : index
    %c0_15 = arith.constant 0 : index
    %c0_16 = arith.constant 0 : index
    %c0_17 = arith.constant 0 : index
    %34 = vector.load %arg3[%c1, %c0_15, %c0_16, %c0_17] : memref<4x4x16x16xbf16, #tpu.memory_space<vmem>>, vector<1x4x16x16xbf16>
    %35 = vector.shape_cast %34 : vector<1x4x16x16xbf16> to vector<4x16x16xbf16>
    %36 = arith.extf %35 : vector<4x16x16xbf16> to vector<4x16x16xf32>
    %37 = arith.addf %33, %36 : vector<4x16x16xf32>
    %cst_18 = arith.constant dense<0xFF800000> : vector<4x16xf32>
    %38 = vector.multi_reduction <maximumf>, %37, %cst_18 [2] : vector<4x16x16xf32> to vector<4x16xf32>
    %39 = vector.shape_cast %38 : vector<4x16xf32> to vector<4x16x1xf32>
    %40 = vector.broadcast %39 : vector<4x16x1xf32> to vector<4x16x16xf32>
    %41 = arith.subf %37, %40 : vector<4x16x16xf32>
    %42 = math.exp %41 : vector<4x16x16xf32>
    %cst_19 = arith.constant dense<0.000000e+00> : vector<4x16xf32>
    %43 = vector.multi_reduction <add>, %42, %cst_19 [2] : vector<4x16x16xf32> to vector<4x16xf32>
    %44 = vector.shape_cast %43 : vector<4x16xf32> to vector<4x16x1xf32>
    %45 = tpu.reciprocal %44 {approx = true} : vector<4x16x1xf32> -> vector<4x16x1xf32>
    %46 = vector.broadcast %45 : vector<4x16x1xf32> to vector<4x16x16xf32>
    %47 = arith.mulf %42, %46 : vector<4x16x16xf32>
    %48 = arith.truncf %47 : vector<4x16x16xf32> to vector<4x16x16xbf16>
    %cst_20 = arith.constant dense<0.000000e+00> : vector<4x16x8xf32>
    %49 = tpu.matmul %48, %32, %cst_20 {dimension_numbers = #tpu.dot_dimension_numbers<[2], [1], [1], [2], [0, 0, 0, 1, 1, 2], [0], [0]>} : vector<4x16x16xbf16>, vector<4x16x8xbf16>, vector<4x16x8xf32> -> vector<4x16x8xf32>
    %50 = arith.truncf %49 : vector<4x16x8xf32> to vector<4x16x8xbf16>
    %51 = vector.extract_strided_slice %8 {offsets = [0, 0, 16], sizes = [4, 16, 8], strides = [1, 1, 1]} : vector<4x16x96xbf16> to vector<4x16x8xbf16>
    %52 = vector.extract_strided_slice %8 {offsets = [0, 0, 48], sizes = [4, 16, 8], strides = [1, 1, 1]} : vector<4x16x96xbf16> to vector<4x16x8xbf16>
    %53 = vector.extract_strided_slice %8 {offsets = [0, 0, 80], sizes = [4, 16, 8], strides = [1, 1, 1]} : vector<4x16x96xbf16> to vector<4x16x8xbf16>
    %cst_21 = arith.constant dense<0.000000e+00> : vector<4x16x16xf32>
    %54 = tpu.matmul %51, %52, %cst_21 {dimension_numbers = #tpu.dot_dimension_numbers<[2], [2], [1], [1], [0, 0, 0, 1, 1, 1], [0], [0]>} : vector<4x16x8xbf16>, vector<4x16x8xbf16>, vector<4x16x16xf32> -> vector<4x16x16xf32>
    %c2 = arith.constant 2 : index
    %c0_22 = arith.constant 0 : index
    %c0_23 = arith.constant 0 : index
    %c0_24 = arith.constant 0 : index
    %55 = vector.load %arg3[%c2, %c0_22, %c0_23, %c0_24] : memref<4x4x16x16xbf16, #tpu.memory_space<vmem>>, vector<1x4x16x16xbf16>
    %56 = vector.shape_cast %55 : vector<1x4x16x16xbf16> to vector<4x16x16xbf16>
    %57 = arith.extf %56 : vector<4x16x16xbf16> to vector<4x16x16xf32>
    %58 = arith.addf %54, %57 : vector<4x16x16xf32>
    %cst_25 = arith.constant dense<0xFF800000> : vector<4x16xf32>
    %59 = vector.multi_reduction <maximumf>, %58, %cst_25 [2] : vector<4x16x16xf32> to vector<4x16xf32>
    %60 = vector.shape_cast %59 : vector<4x16xf32> to vector<4x16x1xf32>
    %61 = vector.broadcast %60 : vector<4x16x1xf32> to vector<4x16x16xf32>
    %62 = arith.subf %58, %61 : vector<4x16x16xf32>
    %63 = math.exp %62 : vector<4x16x16xf32>
    %cst_26 = arith.constant dense<0.000000e+00> : vector<4x16xf32>
    %64 = vector.multi_reduction <add>, %63, %cst_26 [2] : vector<4x16x16xf32> to vector<4x16xf32>
    %65 = vector.shape_cast %64 : vector<4x16xf32> to vector<4x16x1xf32>
    %66 = tpu.reciprocal %65 {approx = true} : vector<4x16x1xf32> -> vector<4x16x1xf32>
    %67 = vector.broadcast %66 : vector<4x16x1xf32> to vector<4x16x16xf32>
    %68 = arith.mulf %63, %67 : vector<4x16x16xf32>
    %69 = arith.truncf %68 : vector<4x16x16xf32> to vector<4x16x16xbf16>
    %cst_27 = arith.constant dense<0.000000e+00> : vector<4x16x8xf32>
    %70 = tpu.matmul %69, %53, %cst_27 {dimension_numbers = #tpu.dot_dimension_numbers<[2], [1], [1], [2], [0, 0, 0, 1, 1, 2], [0], [0]>} : vector<4x16x16xbf16>, vector<4x16x8xbf16>, vector<4x16x8xf32> -> vector<4x16x8xf32>
    %71 = arith.truncf %70 : vector<4x16x8xf32> to vector<4x16x8xbf16>
    %72 = vector.extract_strided_slice %8 {offsets = [0, 0, 24], sizes = [4, 16, 8], strides = [1, 1, 1]} : vector<4x16x96xbf16> to vector<4x16x8xbf16>
    %73 = vector.extract_strided_slice %8 {offsets = [0, 0, 56], sizes = [4, 16, 8], strides = [1, 1, 1]} : vector<4x16x96xbf16> to vector<4x16x8xbf16>
    %74 = vector.extract_strided_slice %8 {offsets = [0, 0, 88], sizes = [4, 16, 8], strides = [1, 1, 1]} : vector<4x16x96xbf16> to vector<4x16x8xbf16>
    %cst_28 = arith.constant dense<0.000000e+00> : vector<4x16x16xf32>
    %75 = tpu.matmul %72, %73, %cst_28 {dimension_numbers = #tpu.dot_dimension_numbers<[2], [2], [1], [1], [0, 0, 0, 1, 1, 1], [0], [0]>} : vector<4x16x8xbf16>, vector<4x16x8xbf16>, vector<4x16x16xf32> -> vector<4x16x16xf32>
    %c3 = arith.constant 3 : index
    %c0_29 = arith.constant 0 : index
    %c0_30 = arith.constant 0 : index
    %c0_31 = arith.constant 0 : index
    %76 = vector.load %arg3[%c3, %c0_29, %c0_30, %c0_31] : memref<4x4x16x16xbf16, #tpu.memory_space<vmem>>, vector<1x4x16x16xbf16>
    %77 = vector.shape_cast %76 : vector<1x4x16x16xbf16> to vector<4x16x16xbf16>
    %78 = arith.extf %77 : vector<4x16x16xbf16> to vector<4x16x16xf32>
    %79 = arith.addf %75, %78 : vector<4x16x16xf32>
    %cst_32 = arith.constant dense<0xFF800000> : vector<4x16xf32>
    %80 = vector.multi_reduction <maximumf>, %79, %cst_32 [2] : vector<4x16x16xf32> to vector<4x16xf32>
    %81 = vector.shape_cast %80 : vector<4x16xf32> to vector<4x16x1xf32>
    %82 = vector.broadcast %81 : vector<4x16x1xf32> to vector<4x16x16xf32>
    %83 = arith.subf %79, %82 : vector<4x16x16xf32>
    %84 = math.exp %83 : vector<4x16x16xf32>
    %cst_33 = arith.constant dense<0.000000e+00> : vector<4x16xf32>
    %85 = vector.multi_reduction <add>, %84, %cst_33 [2] : vector<4x16x16xf32> to vector<4x16xf32>
    %86 = vector.shape_cast %85 : vector<4x16xf32> to vector<4x16x1xf32>
    %87 = tpu.reciprocal %86 {approx = true} : vector<4x16x1xf32> -> vector<4x16x1xf32>
    %88 = vector.broadcast %87 : vector<4x16x1xf32> to vector<4x16x16xf32>
    %89 = arith.mulf %84, %88 : vector<4x16x16xf32>
    %90 = arith.truncf %89 : vector<4x16x16xf32> to vector<4x16x16xbf16>
    %cst_34 = arith.constant dense<0.000000e+00> : vector<4x16x8xf32>
    %91 = tpu.matmul %90, %74, %cst_34 {dimension_numbers = #tpu.dot_dimension_numbers<[2], [1], [1], [2], [0, 0, 0, 1, 1, 2], [0], [0]>} : vector<4x16x16xbf16>, vector<4x16x8xbf16>, vector<4x16x8xf32> -> vector<4x16x8xf32>
    %92 = arith.truncf %91 : vector<4x16x8xf32> to vector<4x16x8xbf16>
    %93 = tpu.concatenate %29, %50, %71, %92 in 2 : vector<4x16x8xbf16>, vector<4x16x8xbf16>, vector<4x16x8xbf16>, vector<4x16x8xbf16> -> vector<4x16x32xbf16>
    %94 = vector.shape_cast %93 : vector<4x16x32xbf16> to vector<64x32xbf16>
    %c0_35 = arith.constant 0 : index
    %c0_36 = arith.constant 0 : index
    %95 = vector.load %arg6[%c0_35, %c0_36] : memref<32x32xbf16, #tpu.memory_space<vmem>>, vector<32x32xbf16>
    %cst_37 = arith.constant dense<0.000000e+00> : vector<64x32xf32>
    %96 = tpu.matmul %94, %95, %cst_37 {dimension_numbers = #tpu.dot_dimension_numbers<[1], [0], [0], [1], [0, 0, 1, 1], [], []>} : vector<64x32xbf16>, vector<32x32xbf16>, vector<64x32xf32> -> vector<64x32xf32>
    %c0_38 = arith.constant 0 : index
    %c0_39 = arith.constant 0 : index
    %97 = vector.load %arg7[%c0_38, %c0_39] : memref<1x32xf32, #tpu.memory_space<vmem>>, vector<1x32xf32>
    %98 = vector.broadcast %97 : vector<1x32xf32> to vector<64x32xf32>
    %99 = arith.addf %96, %98 : vector<64x32xf32>
    %100 = vector.shape_cast %99 : vector<64x32xf32> to vector<4x16x32xf32>
    %c0_40 = arith.constant 0 : index
    %c0_41 = arith.constant 0 : index
    %c0_42 = arith.constant 0 : index
    %101 = vector.load %arg8[%c0_40, %c0_41, %c0_42] : memref<4x16x32xf32, #tpu.memory_space<vmem>>, vector<4x16x32xf32>
    tpu.vector_store %arg8[%c0_40, %c0_41, %c0_42], %100 {strides = array<i32>} : memref<4x16x32xf32, #tpu.memory_space<vmem>>, vector<4x16x32xf32>,
    return
  }
  func.func @transform_0(%arg0: i32, %arg1: i32) -> (i32, i32, i32) {
    %c1_i32 = arith.constant 1 : i32
    %0 = arith.muli %arg1, %c1_i32 : i32
    %1 = arith.addi %0, %arg0 : i32
    %c0_i32 = arith.constant 0 : i32
    %c0_i32_0 = arith.constant 0 : i32
    %c0_i32_1 = arith.constant 0 : i32
    return %1, %c0_i32, %c0_i32_0 : i32, i32, i32
  }
  func.func @transform_1(%arg0: i32, %arg1: i32) -> (i32, i32, i32, i32) {
    %c0_i32 = arith.constant 0 : i32
    %c0_i32_0 = arith.constant 0 : i32
    %c0_i32_1 = arith.constant 0 : i32
    %c0_i32_2 = arith.constant 0 : i32
    return %c0_i32, %arg0, %c0_i32_0, %c0_i32_1 : i32, i32, i32, i32
  }
  func.func @transform_2(%arg0: i32, %arg1: i32) -> (i32, i32) {
    %c0_i32 = arith.constant 0 : i32
    %c0_i32_0 = arith.constant 0 : i32
    %c0_i32_1 = arith.constant 0 : i32
    return %c0_i32, %c0_i32_0 : i32, i32
  }
  func.func @transform_3(%arg0: i32, %arg1: i32) -> (i32, i32) {
    %c0_i32 = arith.constant 0 : i32
    %c0_i32_0 = arith.constant 0 : i32
    %c0_i32_1 = arith.constant 0 : i32
    return %c0_i32, %c0_i32_0 : i32, i32
  }
  func.func @transform_4(%arg0: i32, %arg1: i32) -> (i32, i32) {
    %c0_i32 = arith.constant 0 : i32
    %c0_i32_0 = arith.constant 0 : i32
    %c0_i32_1 = arith.constant 0 : i32
    return %c0_i32, %c0_i32_0 : i32, i32
  }
  func.func @transform_5(%arg0: i32, %arg1: i32) -> (i32, i32) {
    %c0_i32 = arith.constant 0 : i32
    %c0_i32_0 = arith.constant 0 : i32
    %c0_i32_1 = arith.constant 0 : i32
    return %c0_i32, %c0_i32_0 : i32, i32
  }
  func.func @transform_6(%arg0: i32, %arg1: i32) -> (i32, i32, i32) {
    %c1_i32 = arith.constant 1 : i32
    %0 = arith.muli %arg1, %c1_i32 : i32
    %1 = arith.addi %0, %arg0 : i32
    %c0_i32 = arith.constant 0 : i32
    %c0_i32_0 = arith.constant 0 : i32
    %c0_i32_1 = arith.constant 0 : i32
    return %1, %c0_i32, %c0_i32_0 : i32, i32, i32
  }
}

</mosaic_0001>

<bundles_post_ra>
// kernel: tpu_custom_call.1
= control target key start
LH: loop header
LB: loop body
LE: loop exit
PB: predicated region body
PF: predicated region fallthrough
CT: control target
= control target key end

     0   :  { %s3467_s0 = inlined_call_operand.hbm [shape: bf16[8,16,32], index: 0, kind: input, shape index: {}]   ;;  %s3468_s1 = inlined_call_operand.hbm [shape: bf16[4,4,16,16], index: 1, kind: input, shape index: {}]   ;;  %s3469_s2 = inlined_call_operand.hbm [shape: bf16[32,96], index: 2, kind: input, shape index: {}]   ;;  %s3470_s3 = inlined_call_operand.vmem [shape: f32[1,96], index: 3, kind: input, shape index: {}]   ;;  %s3471_s4 = inlined_call_operand.hbm [shape: bf16[32,32], index: 4, kind: input, shape index: {}]   ;;  %s3472_s5 = inlined_call_operand.vmem [shape: f32[1,32], index: 5, kind: input, shape index: {}]   ;;  %s3473_s6 = inlined_call_operand.hbm [shape: f32[8,16,32], index: 6, kind: output, shape index: {}]  }
   0x1   :  { %3477 = sst [smem:[#allocation16_spill]] %s3468_s1 }
   0x2   :  { %3478 = sst [smem:[#allocation17_spill]] %s3469_s2 }
   0x3   :  { %3479 = sst [smem:[#allocation18_spill]] %s3471_s4 }
   0x4   :  { %11 = vsyncpa [#allocation3], 0 }
   0x5   :  { %13 = vsyncpa [#allocation3 + $0x1], 0 }
   0x6   :  { %14 = vsyncpa [#allocation6], 0 }
   0x7   :  { %15 = vsyncpa [#allocation9], 0 }
   0x8   :  { %16 = vsyncpa [#allocation4], 0 }
   0x9   :  { %18 = vsyncpa [#allocation4 + $0x1], 0  ;;  %s2760_s21 = smov 0   ;;  %s2762_s22 = smov 0  }
   0xa   :  { %s2764_s23 = smov 0   ;;  %s2766_s24 = smov 0  }
   0xb   :  { %s2768_s25 = smov 0   ;;  %s2770_s26 = smov 0  }
   0xc LB: > { %s2064_s27 = sadd.s32 4294967295, %s2703_s26   ;;  %s2065_s28 = sadd.s32 4294967294, %s2703_s26   ;;  %s2703_s26 = sphi %s2770_s26, %s24_s26   ;;  %s2699_s25 = sphi %s2768_s25, %s3499_s25   ;;  %s2695_s24 = sphi %s2766_s24, %s3498_s24   ;;  %s2691_s23 = sphi %s2764_s23, %s3497_s23   ;;  %s2687_s22 = sphi %s2762_s22, %s3496_s22   ;;  %s2683_s21 = sphi %s2760_s21, %s3495_s21  }
   0xd   : > { %p58_p0 = scmp.ne.s32.totalorder %s2687_s22, %s2683_s21  ;;  %p2794_p1 = scmp.eq.s32.totalorder %s2064_s27, 0 }
   0xe   : > { %p2798_p2 = scmp.eq.s32.totalorder %s2064_s27, 1  ;;  %p200_p3 = scmp.eq.s32.totalorder %s2065_s28, 1 }
   0xf   : > { %p2804_p4 = por %p2794_p1, %p58_p0  ;;  %p2066_p5 = scmp.ge.s32.totalorder %s2703_s26, 1 }
  0x10   : > { %p2809_p6 = por %p200_p3, %p58_p0  ;;  %p207_p7 = scmp.lt.s32.totalorder %s2703_s26, 3 }
  0x11   : > { %s3484_s1 = sld [smem:[#allocation16_spill]]  ;;  %s2705_s13 = smov [#allocation5]  }
  0x12   : > { %p2817_p8 = pnand %p2066_p5, %p207_p7  ;;  %s224_s14 = sshll.u32 %s2705_s13, 4  ;;  %s225_s14 = int_to_ptr.vmem [resolvable:$true] %s224_s14 }
  0x13   : > { %p2070_p11 = scmp.ge.s32.totalorder %s2703_s26, 2  ;;  %s3487_s2 = sld [smem:[#allocation17_spill]] }
  0x14   : > { %p2269_p9 = pneg %p2817_p8  ;;  %s3474_s19 = smov 64  }
  0x15   : > { %s3475_s20 = smov 4   ;;  %s2708_s27 = smov [#allocation7]  }
  0x16   : > { %p2825_p10 = pnand %p2269_p9, %p2794_p1  ;;  %s238_s28 = sshll.u32 %s2708_s27, 4  ;;  %s239_s28 = int_to_ptr.vmem [resolvable:$true] %s238_s28 }
  0x17   : > { %s222_s11 = sshll.u32 %s3484_s1, 4  ;;  %s3488_s4 = sld [smem:[#allocation18_spill]]  ;;  %s223_s11 = int_to_ptr.hbm [resolvable:$true] %s222_s11 }
  0x18   : > { %2272 = dma.hbm_to_vmem [thread:$0]  (!%p2825_p10), %s223_s11, 2048, %s225_s14, [#allocation6], %s3474_s19, %s3474_s19, %s3475_s20  }
  0x19   : > { %s236_s18 = sshll.u32 %s3487_s2, 4  ;;  %s2709_s16 = smov [#allocation8]   ;;  %s237_s18 = int_to_ptr.hbm [resolvable:$true] %s236_s18 }
  0x1a   : > { %2275 = dma.hbm_to_vmem [thread:$0]  (!%p2825_p10), %s237_s18, 256, %s239_s28, [#allocation6], %s3474_s19, %s3474_s19, %s3475_s20  }
  0x1b   : > { %s255_s17 = sshll.u32 %s2709_s16, 4  ;;  %s33_s11 = sadd.s32 1, %s2699_s25  ;;  %s256_s17 = int_to_ptr.vmem [resolvable:$true] %s255_s17 }
  0x1c   : > { %p34_p12 = scmp.ge.s32.totalorder %s33_s11, 2  ;;  %s45_s14 = sadd.s32 1, %s2691_s23 }
  0x1d   : > { %s253_s13 = sshll.u32 %s3488_s4, 4  ;;  %p52_p13 = scmp.ne.s32.totalorder %s2691_s23, %s2687_s22  ;;  %s254_s13 = int_to_ptr.hbm [resolvable:$true] %s253_s13 }
  0x1e   : > { %2278 = dma.hbm_to_vmem [thread:$0]  (!%p2825_p10), %s254_s13, 256, %s256_s17, [#allocation9], %s3474_s19, %s3474_s19, %s3475_s20  }
  0x1f   : > { %p53_p0 = scmp.eq.s32.totalorder %s2703_s26, 0  ;;  %s3501_s11 = smov (%p34_p12, %s33_s11), 0 }
  0x20   : > { %3489 = sst [smem:[#allocation15_spill]] %s3501_s11  ;;  %p2864_p5 = por %p2798_p2, %p52_p13 }
  0x21   : > { %p2858_p3 = por %p53_p0, %p52_p13  ;;  %s42_s27 = ssub.s32 %s2699_s25, %s3501_s11 }
  0x22   : > { %p2290_p7 = scmp.lt.s32.totalorder %s2703_s26, 2  ;;  %p43_p9 = scmp.eq.s32.totalorder %s42_s27, 0 }
  0x23   : > { %s272_s28 = sand.u32 1, %s2691_s23   ;;  %s2160_s13 = sshll.u32 %s2699_s25, 5 }
  0x24   : > { %s2071_s9 = sshll.u32 %s272_s28, 5  ;;  %s283_s19 = scalar_lea.hbm %s3467_s0, %s2160_s13 }
  0x25   : > { %s2873_s10 = scalar_select %p43_p9, %s2691_s23, %s45_s14  }
  0x26   : > { %s276_s20 = scalar_lea.vmem [#allocation2], %s2071_s9  ;;  %s284_s30 = sshll.u32 %s283_s19, 4  ;;  %s285_s30 = int_to_ptr.hbm [resolvable:$true] %s284_s30 }
  0x27   : > { %s286_s1 = sshll.u32 %s276_s20, 4  ;;  %p2280_p2 = pnand %p2290_p7, %p2858_p3  ;;  %s287_s1 = int_to_ptr.vmem [resolvable:$true] %s286_s1 }
  0x28   : > { %s273_s2 = scalar_lea.sflag [#allocation3], %s272_s28  ;;  %s3492_s4 = smov 4  }
  0x29   : > { %s3493_s11 = smov 64   ;;  %298 = sbr.rel (%p2817_p8) target bundleno = 2584 (0xa18), region = 44 }
  0x2a   : > { %2282 = dma.hbm_to_vmem [thread:$0]  (!%p2280_p2), %s285_s30, 512, %s287_s1, %s273_s2, %s3493_s11, %s3493_s11, %s3492_s4  }
  0x2b   : > { %s2887_s14 = sand.u32 (!%p2817_p8), 1, %s2687_s22  }
  0x2c   : > { %s2076_s20 = sshll.u32 (!%p2817_p8), %s2887_s14, 5  ;;  %s301_s19 = scalar_lea.sflag (!%p2817_p8), [#allocation3], %s2887_s14 }
  0x2d   : > { %s304_s27 = scalar_lea.vmem (!%p2817_p8), [#allocation2], %s2076_s20 }
  0x2e   : > { %2666 = dma.done.wait (%p2804_p4), %s301_s19, 512  }
  0x2f   : > { %2668 = vsyncadd (%p2804_p4), %s301_s19, 4294966784 }
  0x30   : > { %2670 = dma.done.wait (%p2794_p1), [#allocation6], 2304  }
  0x31   : > { %2672 = vsyncadd (%p2794_p1), [#allocation6], 4294964992 }
  0x32   : > { %2674 = dma.done.wait (%p2794_p1), [#allocation9], 256  }
  0x33   : > { %2676 = vsyncadd (%p2794_p1), [#allocation9], 4294967040  ;;  %v2166_v0 = vld [vmem:[#allocation7 + $0x8] sm:$0xff]  ;;  %v2165_v1 = vld [vmem:[#allocation7] sm:$0xff]  ;;  %vm403_vm0 = vcmask 261120   ;;  %s2710_s4 = smov 96  }
  0x34   : > { %2247 = vmatpush.bf16.msra.mxu1 %v2166_v0  ;;  %2249 = vmatpush.bf16.msra.mxu3 %v2166_v0  ;;  %v2162_v2 = vld [vmem:[%s304_s27 + $0x8] sm:$0xff]  ;;  %v2164_v3 = vld [vmem:[%s304_s27 + $0x18] sm:$0xff]  ;;  %v2161_v4 = vld [vmem:[%s304_s27] sm:$0xff]  ;;  %s2711_s29 = smov 64   ;;  %vm476_vm1 = vcmask 64512   ;;  %vm578_vm2 = vcmask 130048  }
  0x35   : > { %422 = vmatpush.bf16.msra.mxu0 %v2166_v0  ;;  %2248 = vmatpush.bf16.msra.mxu2 %v2166_v0  ;;  %v2163_v5 = vld [vmem:[%s304_s27 + $0x10] sm:$0xff]  ;;  %v2363_v7 = vld [vmem:[%s3470_s3] ss:$0 sm:$0xff]  ;;  %v2235_v52 = vld [vmem:[#allocation5 + $0x8] sm:$0xff]   ;;  %s2712_s7 = smov 88   ;;  %s2713_s12 = smov 120  }
  0x36   : > { %v2172_v53 = vld [vmem:[#allocation5] sm:$0xff]   ;;  %v2177_v54 = vunpack.c.l.bf16 %v2235_v52  ;;  %v2178_v62 = vunpack.c.h.bf16 %v2235_v52  ;;  %s2714_s11 = smov 56   ;;  %s2715_s18 = smov 80   ;;  %vm1858_vm3 = vcmask 195584  }
  0x37   : > { %v2173_v55 = vunpack.c.l.bf16 %v2172_v53  ;;  %v2174_v63 = vunpack.c.h.bf16 %v2172_v53  ;;  %s2716_s28 = smov 112   ;;  %s2717_s9 = smov 48  }
  0x38   : > { %2250 = vmatpush.bf16.msra.mxu1 %v2165_v1  ;;  %2252 = vmatpush.bf16.msra.mxu3 %v2165_v1  ;;  %s2718_s13 = smov 104   ;;  %s2719_s16 = smov 72  }
  0x39   : > { %423 = vmatpush.bf16.msra.mxu0 %v2165_v1  ;;  %2251 = vmatpush.bf16.msra.mxu2 %v2165_v1  ;;  %s2720_s17 = smov 40   ;;  %s2721_s30 = smov 8  }
  0x3a   : > { %s2722_s20 = smov 16   ;;  %s2723_s19 = smov 24  }
  0x3b   : > { %2106 = vmatmul.msk.bf16.vlgmr.msra.gmra.mxu1 %vm403_vm0, %v2162_v2  ;;  %2108 = vmatmul.msk.bf16.vlgmr.msra.gmra.mxu3 %vm403_vm0, %v2164_v3  ;;  %v2236_v3 = vld [vmem:[#allocation5 + $0x10] sm:$0xff]   ;;  %s2080_s27 = sshll.u32 %s2887_s14, 6 }
  0x3c   : > { %2105 = vmatmul.msk.bf16.vlgmr.msra.gmra.mxu0 %vm403_vm0, %v2161_v4  ;;  %2107 = vmatmul.msk.bf16.vlgmr.msra.gmra.mxu2 %vm403_vm0, %v2163_v5 }
  0xb8   : > { %v430_v6 = vpop.f32.mrf.mxu1 }
  0xb9   : > { %v425_v8 = vpop.f32.mrf.mxu0  ;;  %v431_v10 = vadd.f32 %v2363_v7, %v430_v6  ;;  %v2181_v6 = vunpack.c.l.bf16 %v2236_v3 }
  0xba   : > { %v426_v9 = vadd.f32 %v2363_v7, %v425_v8 }
  0xbb   : > { %v447_v15 = vpack.c.bf16 %v431_v10, %v431_v10  ;;  %v2237_v10 = vld [vmem:[#allocation5 + $0x18] sm:$0xff]  }
  0xbc   : > { %v445_v13 = vpack.c.bf16 %v426_v9, %v426_v9 }
  0xbd   : > { %v499_v23 = vunpack.c.l.b16 %v447_v15  ;;  %v2182_v15 = vunpack.c.h.bf16 %v2236_v3 }
  0xbe   : > { %v440_v11 = vpop.f32.mrf.mxu3  ;;  %v471_v21 = vunpack.c.l.b16 %v445_v13 }
  0xbf   : > { %v435_v12 = vpop.f32.mrf.mxu2  ;;  %v441_v16 = vadd.f32 %v2363_v7, %v440_v11  ;;  %v2185_v11 = vunpack.c.l.bf16 %v2237_v10 }
  0xc0   : > { %v432_v14 = vpop.f32.mrf.mxu1  ;;  %v436_v29 = vadd.f32 %v2363_v7, %v435_v12 }
  0xc1   : > { %v433_v17 = vadd.f32 %v2363_v7, %v432_v14  ;;  %v427_v18 = vpop.f32.mrf.mxu0  ;;  %v451_v24 = vpack.c.bf16 %v441_v16, %v441_v16 }
  0xc2   : > { %v428_v19 = vadd.f32 %v2363_v7, %v427_v18  ;;  %v449_v36 = vpack.c.bf16 %v436_v29, %v436_v29 }
  0xc3   : > { %v448_v20 = vpack.c.bf16 %v433_v17, %v433_v17  ;;  %v553_v34 = vunpack.c.l.b16 %v451_v24 }
  0xc4   : > { %v446_v22 = vpack.c.bf16 %v428_v19, %v428_v19  ;;  %v526_v40 = vunpack.c.l.b16 %v449_v36  ;;  %v2186_v19 = vunpack.c.h.bf16 %v2237_v10 }
  0xc5   : > { %v500_v25 = vunpack.c.l.b16 %v448_v20 }
  0xc6   : > { %v442_v26 = vpop.f32.mrf.mxu3  ;;  %v472_v27 = vunpack.c.l.b16 %v446_v22 }
  0xc7   : > { %v2910_v28 = vpack.c.b16 %v500_v25, %v499_v23  ;;  %v443_v30 = vadd.f32 %v2363_v7, %v442_v26  ;;  %v437_v31 = vpop.f32.mrf.mxu2 }
  0xc8   : > { %v2912_v32 = vpack.c.b16 %v472_v27, %v471_v21  ;;  %v438_v33 = vadd.f32 %v2363_v7, %v437_v31 }
  0xc9   : > { %v452_v35 = vpack.c.bf16 %v443_v30, %v443_v30  ;;  %502 = vrot.lane.b32.xlu0 %v2910_v28, %s2710_s4 }
  0xca   : > { %680 = vrot.lane.b32.xlu2 %v2912_v32, %s2711_s29  ;;  %v450_v38 = vpack.c.bf16 %v438_v33, %v438_v33 }
  0xcb   : > { %v554_v37 = vunpack.c.l.b16 %v452_v35 }
  0xcc   : > { %v527_v41 = vunpack.c.l.b16 %v450_v38 }
  0xcd   : > { %v2917_v39 = vpack.c.b16 %v554_v37, %v553_v34 }
  0xce   : > { %v2921_v42 = vpack.c.b16 %v527_v41, %v526_v40 }
  0xcf   : > { %556 = vrot.lane.b32.xlu1 %v2917_v39, %s2710_s4 }
  0xd1   : > { %474 = vrot.lane.b32.xlu0 %v2912_v32, %s2710_s4 }
  0xd7   : > { %529 = vrot.lane.b32.xlu1 %v2921_v42, %s2710_s4  ;;  %s3395_s4 = scalar_lea.vmem [#allocation10], %s2080_s27 }
 0x124   : > { %v681_v44 = vpop.permute.xlu2 %680 }
 0x13b   : > { %v503_v43 = vpop.permute.xlu0 %502 }
 0x13c   : > { %v508_v45 = vsel %vm476_vm1, %v503_v43, 0 }
 0x13d   : > { %517 = vmatpush.bf16.xpose.msrb.mxu2 %v508_v45 }
 0x141   : > { %v557_v46 = vpop.permute.xlu1 %556 }
 0x142   : > { %v562_v47 = vsel %vm476_vm1, %v557_v46, 0 }
 0x143   : > { %v475_v48 = vpop.permute.xlu0 %474 }
 0x144   : > { %2110 = vmatmul.msk.bf16.vlgmr.msrb.gmra.mxu2 %vm476_vm1, %v2910_v28  ;;  %v481_v49 = vsel %vm476_vm1, %v475_v48, 0 }
 0x145   : > { %693 = vmatpush.bf16.msra.mxu2 %v681_v44  ;;  %490 = vmatpush.bf16.xpose.msrb.mxu1 %v481_v49 }
 0x149   : > { %v530_v50 = vpop.permute.xlu1 %529 }
 0x14a   : > { %v535_v51 = vsel %vm476_vm1, %v530_v50, 0 }
 0x14b   : > { %544 = vmatpush.bf16.xpose.msrb.mxu3 %v535_v51 }
 0x14c   : > { %2109 = vmatmul.msk.bf16.vlgmr.msrb.gmra.mxu1 %vm476_vm1, %v2912_v32 }
 0x14d   : > { %571 = vmatpush.bf16.xpose.msra.mxu1 %v562_v47 }
 0x152   : > { %2111 = vmatmul.msk.bf16.vlgmr.msrb.gmra.mxu3 %vm476_vm1, %v2921_v42 }
 0x15c   : > { %2112 = vmatmul.msk.bf16.vlgmr.msra.gmra.mxu1 %vm476_vm1, %v2917_v39 }
 0x1c7   : > { %v519_v56 = vpop.f32.mrf.mxu2 }
 0x1c8   : > { %v520_v57 = vadd.f32 %v2177_v54, %v519_v56 }
 0x1c9   : > { %v492_v58 = vpop.f32.mrf.mxu1 }
 0x1ca   : > { %v493_v59 = vadd.f32 %v2173_v55, %v492_v58  ;;  %v585_v60 = vsel %vm578_vm2, %v520_v57, -inf }
 0x1cb   : > { %586 = vmax.xlane.f32.xlu0 %v585_v60 }
 0x1cc   : > { %v579_v61 = vsel %vm578_vm2, %v493_v59, -inf }
 0x1cd   : > { %580 = vmax.xlane.f32.xlu2 %v579_v61 }
 0x1cf   : > { %v521_v0 = vpop.f32.mrf.mxu2 }
 0x1d0   : > { %v522_v1 = vadd.f32 %v2178_v62, %v521_v0 }
 0x1d1   : > { %v494_v2 = vpop.f32.mrf.mxu1 }
 0x1d2   : > { %v2938_v4 = vadd.f32 %v2174_v63, %v494_v2  ;;  %v588_v5 = vsel %vm578_vm2, %v522_v1, -inf }
 0x1d3   : > { %589 = vmax.xlane.f32.xlu1 %v588_v5 }
 0x1d4   : > { %v582_v7 = vsel %vm578_vm2, %v2938_v4, -inf }
 0x1d5   : > { %v546_v8 = vpop.f32.mrf.mxu3  ;;  %583 = vmax.xlane.f32.xlu2 %v582_v7 }
 0x1d6   : > { %v547_v9 = vadd.f32 %v2181_v6, %v546_v8 }
 0x1d8   : > { %v591_v12 = vsel %vm578_vm2, %v547_v9, -inf }
 0x1d9   : > { %v573_v13 = vpop.f32.mrf.mxu1 }
 0x1da   : > { %v574_v14 = vadd.f32 %v2185_v11, %v573_v13 }
 0x1dc   : > { %v597_v16 = vsel %vm578_vm2, %v574_v14, -inf }
 0x1dd   : > { %592 = vmax.xlane.f32.xlu2 %v591_v12  ;;  %v548_v17 = vpop.f32.mrf.mxu3 }
 0x1de   : > { %v2945_v18 = vadd.f32 %v2182_v15, %v548_v17 }
 0x1e0   : > { %v594_v20 = vsel %vm578_vm2, %v2945_v18, -inf }
 0x1e1   : > { %v575_v21 = vpop.f32.mrf.mxu1 }
 0x1e2   : > { %v576_v22 = vadd.f32 %v2186_v19, %v575_v21 }
 0x1e4   : > { %v600_v23 = vsel %vm578_vm2, %v576_v22, -inf }
 0x1e5   : > { %598 = vmax.xlane.f32.xlu2 %v597_v16 }
 0x1ec   : > { %755 = vrot.lane.b32.xlu1 %v2917_v39, %s2711_s29 }
 0x1ed   : > { %595 = vmax.xlane.f32.xlu2 %v594_v20 }
 0x1f4   : > { %826 = vrot.lane.b32.xlu1 %v2910_v28, %s2712_s7 }
 0x1f5   : > { %601 = vmax.xlane.f32.xlu2 %v600_v23 }
 0x23e   : > { %v587_v24 = vpop.xlane.xlu0 %586 }
 0x23f   : > { %v605_v25 = vsub.f32 %v520_v57, %v587_v24 }
 0x240   : > { %v581_v26 = vpop.xlane.xlu2 %580 }
 0x241   : > { %v615_v27 = vmul.f32 1.442695, %v605_v25  ;;  %v603_v29 = vsub.f32 %v493_v59, %v581_v26 }
 0x243   : > { %2365 = vpow2.f32 %v615_v27  ;;  %v611_v30 = vmul.f32 1.442695, %v603_v29 }
 0x245   : > { %2367 = vpow2.f32 %v611_v30 }
 0x246   : > { %v590_v37 = vpop.xlane.xlu1 %589 }
 0x247   : > { %v606_v41 = vsub.f32 %v522_v1, %v590_v37 }
 0x248   : > { %v584_v31 = vpop.xlane.xlu2 %583 }
 0x249   : > { %v2954_v33 = vpop.eup %2365  ;;  %v617_v44 = vmul.f32 1.442695, %v606_v41  ;;  %v604_v1 = vsub.f32 %v2938_v4, %v584_v31 }
 0x24a   : > { %v633_v34 = vsel %vm578_vm2, %v2954_v33, 0.0 }
 0x24b   : > { %v2958_v35 = vpop.eup %2367  ;;  %634 = vadd.xlane.f32.xlu0 %v633_v34  ;;  %v613_v2 = vmul.f32 1.442695, %v604_v1 }
 0x24c   : > { %v627_v36 = vsel %vm578_vm2, %v2958_v35, 0.0 }
 0x24d   : > { %628 = vadd.xlane.f32.xlu2 %v627_v36 }
 0x250   : > { %v593_v38 = vpop.xlane.xlu2 %592 }
 0x251   : > { %v607_v40 = vsub.f32 %v547_v9, %v593_v38 }
 0x253   : > { %v619_v43 = vmul.f32 1.442695, %v607_v40 }
 0x255   : > { %2369 = vpow2.f32 %v619_v43 }
 0x256   : > { %2371 = vpow2.f32 %v617_v44 }
 0x258   : > { %v599_v45 = vpop.xlane.xlu2 %598 }
 0x259   : > { %v609_v47 = vsub.f32 %v574_v14, %v599_v45 }
 0x25b   : > { %v2962_v46 = vpop.eup %2369  ;;  %v623_v50 = vmul.f32 1.442695, %v609_v47 }
 0x25c   : > { %v639_v48 = vsel %vm578_vm2, %v2962_v46, 0.0  ;;  %v2372_v52 = vpop.eup %2371 }
 0x25d   : > { %640 = vadd.xlane.f32.xlu1 %v639_v48  ;;  %2373 = vpow2.f32 %v623_v50  ;;  %v636_v53 = vsel %vm578_vm2, %v2372_v52, 0.0 }
 0x25e   : > { %v756_v49 = vpop.permute.xlu1 %755 }
 0x25f   : > { %768 = vmatpush.bf16.msrb.mxu2 %v756_v49  ;;  %705 = vrot.lane.b32.xlu0 %v2910_v28, %s2711_s29 }
 0x260   : > { %v596_v51 = vpop.xlane.xlu2 %595 }
 0x261   : > { %v608_v61 = vsub.f32 %v2945_v18, %v596_v51 }
 0x263   : > { %v2971_v55 = vpop.eup %2373  ;;  %v621_v62 = vmul.f32 1.442695, %v608_v61 }
 0x264   : > { %v645_v58 = vsel %vm578_vm2, %v2971_v55, 0.0 }
 0x265   : > { %802 = vrot.lane.b32.xlu2 %v2912_v32, %s2712_s7  ;;  %637 = vadd.xlane.f32.xlu1 %v636_v53 }
 0x266   : > { %v827_v6 = vpop.permute.xlu1 %826 }
 0x267   : > { %v832_v16 = vsel %vm476_vm1, %v827_v6, 0 }
 0x268   : > { %v602_v54 = vpop.xlane.xlu2 %601 }
 0x269   : > { %v610_v56 = vsub.f32 %v576_v22, %v602_v54 }
 0x26b   : > { %v625_v57 = vmul.f32 1.442695, %v610_v56 }
 0x26d   : > { %2375 = vpow2.f32 %v625_v57  ;;  %800 = vrot.lane.b32.xlu2 %v2912_v32, %s2713_s12  ;;  %646 = vadd.xlane.f32.xlu1 %v645_v58 }
 0x26e   : > { %2377 = vpow2.f32 %v621_v62 }
 0x26f   : > { %2379 = vpow2.f32 %v613_v2 }
 0x273   : > { %v2976_v59 = vpop.eup %2375 }
 0x274   : > { %v648_v60 = vsel %vm578_vm2, %v2976_v59, 0.0  ;;  %v2378_v63 = vpop.eup %2377 }
 0x275   : > { %730 = vrot.lane.b32.xlu2 %v2921_v42, %s2711_s29  ;;  %649 = vadd.xlane.f32.xlu1 %v648_v60  ;;  %v642_v0 = vsel %vm578_vm2, %v2378_v63, 0.0  ;;  %v2988_v3 = vpop.eup %2379  ;;  %s2170_s29 = sshll.u32 %s2695_s24, 6 }
 0x276   : > { %v630_v5 = vsel %vm578_vm2, %v2988_v3, 0.0 }
 0x289   : > { %643 = vadd.xlane.f32.xlu0 %v642_v0 }
 0x28e   : > { %824 = vrot.lane.b32.xlu1 %v2910_v28, %s2713_s12 }
 0x296   : > { %997 = vrot.lane.b32.xlu1 %v2912_v32, %s2714_s11 }
 0x29d   : > { %874 = vrot.lane.b32.xlu0 %v2917_v39, %s2712_s7 }
 0x29e   : > { %631 = vadd.xlane.f32.xlu2 %v630_v5 }
 0x2b6   : > { %850 = vrot.lane.b32.xlu2 %v2921_v42, %s2712_s7 }
 0x2be   : > { %848 = vrot.lane.b32.xlu2 %v2921_v42, %s2713_s12  ;;  %v635_v8 = vpop.xlane.xlu0 %634 }
 0x2bf   : > { %2381 = vrcp.f32 %v635_v8 }
 0x2c0   : > { %v629_v4 = vpop.xlane.xlu2 %628 }
 0x2c5   : > { %v2382_v15 = vpop.eup %2381 }
 0x2c6   : > { %872 = vrot.lane.b32.xlu2 %v2917_v39, %s2713_s12  ;;  %v661_v17 = vmul.f32 %v2382_v15, %v2954_v33 }
 0x2c8   : > { %v803_v7 = vpop.permute.xlu2 %802  ;;  %v669_v19 = vpack.c.bf16 %v661_v17, %v661_v17 }
 0x2c9   : > { %v808_v12 = vsel %vm476_vm1, %v803_v7, 0 }
 0x2ca   : > { %v702_v22 = vunpack.c.l.b16 %v669_v19 }
 0x2d0   : > { %v641_v9 = vpop.xlane.xlu1 %640  ;;  %v801_v10 = vpop.permute.xlu2 %800 }
 0x2d1   : > { %v706_v11 = vpop.permute.xlu0 %705 }
 0x2d2   : > { %718 = vmatpush.bf16.msra.mxu3 %v706_v11 }
 0x2d6   : > { %817 = vmatpush.bf16.xpose.msrb.mxu3 %v808_v12 }
 0x2d8   : > { %v638_v13 = vpop.xlane.xlu1 %637  ;;  %v731_v14 = vpop.permute.xlu2 %730 }
 0x2d9   : > { %2383 = vrcp.f32 %v638_v13  ;;  %743 = vmatpush.bf16.msrb.mxu1 %v731_v14 }
 0x2da   : > { %2385 = vrcp.f32 %v641_v9 }
 0x2dd   : > { %841 = vmatpush.bf16.xpose.msra.mxu1 %v832_v16 }
 0x2df   : > { %v2384_v18 = vpop.eup %2383 }
 0x2e0   : > { %v662_v20 = vmul.f32 %v2384_v18, %v2372_v52  ;;  %v647_v25 = vpop.xlane.xlu1 %646  ;;  %v2386_v29 = vpop.eup %2385 }
 0x2e1   : > { %v663_v30 = vmul.f32 %v2386_v29, %v2962_v46 }
 0x2e2   : > { %v670_v21 = vpack.c.bf16 %v662_v20, %v662_v20  ;;  %v2238_v20 = vld [vmem:[#allocation5 + $0x28] sm:$0xff]  }
 0x2e3   : > { %v671_v34 = vpack.c.bf16 %v663_v30, %v663_v30 }
 0x2e4   : > { %v703_v23 = vunpack.c.l.b16 %v670_v21 }
 0x2e5   : > { %v727_v38 = vunpack.c.l.b16 %v671_v34 }
 0x2e6   : > { %v704_v24 = vpack.c.b16 %v703_v23, %v702_v22 }
 0x2e8   : > { %2114 = vmatmul.msk.bf16.vlgmr.msra.gmra.mxu3 %vm578_vm2, %v704_v24  ;;  %v650_v26 = vpop.xlane.xlu1 %649  ;;  %v2193_v24 = vunpack.c.l.bf16 %v2238_v20 }
 0x2f8   : > { %2117 = vmatmul.msk.bf16.vlgmr.msrb.gmra.mxu3 %vm476_vm1, %v801_v10  ;;  %v2188_v10 = vld [vmem:[#allocation5 + $0x20] sm:$0xff]  }
 0x2f9   : > { %v2189_v12 = vunpack.c.l.bf16 %v2188_v10 }
 0x2fc   : > { %v644_v27 = vpop.xlane.xlu0 %643 }
 0x2fd   : > { %2387 = vrcp.f32 %v644_v27  ;;  %v2190_v27 = vunpack.c.h.bf16 %v2188_v10 }
 0x2fe   : > { %2389 = vrcp.f32 %v629_v4 }
 0x300   : > { %v825_v31 = vpop.permute.xlu1 %824 }
 0x303   : > { %v2388_v33 = vpop.eup %2387 }
 0x304   : > { %v664_v36 = vmul.f32 %v2388_v33, %v2378_v63  ;;  %v2390_v48 = vpop.eup %2389 }
 0x305   : > { %v659_v46 = vmul.f32 %v2390_v48, %v2958_v35 }
 0x306   : > { %v672_v37 = vpack.c.bf16 %v664_v36, %v664_v36 }
 0x307   : > { %v667_v50 = vpack.c.bf16 %v659_v46, %v659_v46 }
 0x308   : > { %v728_v40 = vunpack.c.l.b16 %v672_v37  ;;  %v998_v41 = vpop.permute.xlu1 %997 }
 0x309   : > { %1010 = vmatpush.bf16.msrb.mxu0 %v998_v41  ;;  %v677_v54 = vunpack.c.l.b16 %v667_v50 }
 0x30a   : > { %v729_v43 = vpack.c.b16 %v728_v40, %v727_v38 }
 0x30c   : > { %2115 = vmatmul.msk.bf16.vlgmr.msrb.gmra.mxu1 %vm578_vm2, %v729_v43 }
 0x30f   : > { %v875_v44 = vpop.permute.xlu0 %874 }
 0x310   : > { %v880_v45 = vsel %vm476_vm1, %v875_v44, 0 }
 0x311   : > { %v632_v47 = vpop.xlane.xlu2 %631  ;;  %889 = vmatpush.bf16.xpose.msra.mxu3 %v880_v45 }
 0x312   : > { %2391 = vrcp.f32 %v632_v47 }
 0x313   : > { %2393 = vrcp.f32 %v650_v26 }
 0x314   : > { %2395 = vrcp.f32 %v647_v25 }
 0x318   : > { %v2392_v49 = vpop.eup %2391 }
 0x319   : > { %v660_v51 = vmul.f32 %v2392_v49, %v2988_v3  ;;  %v851_v52 = vpop.permute.xlu2 %850  ;;  %v2394_v58 = vpop.eup %2393 }
 0x31a   : > { %v856_v60 = vsel %vm476_vm1, %v851_v52, 0  ;;  %v2396_v35 = vpop.eup %2395  ;;  %v666_v62 = vmul.f32 %v2394_v58, %v2976_v59  ;;  %v2239_v52 = vld [vmem:[#allocation5 + $0x30] sm:$0xff]  }
 0x31b   : > { %v668_v53 = vpack.c.bf16 %v660_v51, %v660_v51  ;;  %v665_v63 = vmul.f32 %v2396_v35, %v2971_v55 }
 0x31c   : > { %2118 = vmatmul.msk.bf16.vlgmr.msra.gmra.mxu1 %vm476_vm1, %v825_v31  ;;  %v674_v0 = vpack.c.bf16 %v666_v62, %v666_v62  ;;  %v2194_v31 = vunpack.c.h.bf16 %v2238_v20  ;;  %v2198_v62 = vunpack.c.h.bf16 %v2239_v52 }
 0x31d   : > { %v678_v56 = vunpack.c.l.b16 %v668_v53  ;;  %v673_v1 = vpack.c.bf16 %v665_v63, %v665_v63 }
 0x31e   : > { %v753_v3 = vunpack.c.l.b16 %v674_v0 }
 0x31f   : > { %v679_v57 = vpack.c.b16 %v678_v56, %v677_v54  ;;  %v752_v5 = vunpack.c.l.b16 %v673_v1  ;;  %v2240_v1 = vld [vmem:[#allocation5 + $0x38] sm:$0xff]  }
 0x321   : > { %2113 = vmatmul.msk.bf16.vlgmr.msra.gmra.mxu2 %vm578_vm2, %v679_v57  ;;  %v849_v61 = vpop.permute.xlu2 %848  ;;  %v754_v4 = vpack.c.b16 %v753_v3, %v752_v5  ;;  %v2197_v57 = vunpack.c.l.bf16 %v2239_v52 }
 0x322   : > { %865 = vmatpush.bf16.xpose.msra.mxu2 %v856_v60 }
 0x329   : > { %v873_v2 = vpop.permute.xlu2 %872 }
 0x32a   : > { %2120 = vmatmul.msk.bf16.vlgmr.msra.gmra.mxu3 %vm476_vm1, %v873_v2  ;;  %v2202_v2 = vunpack.c.h.bf16 %v2240_v1 }
 0x331   : > { %2116 = vmatmul.msk.bf16.vlgmr.msrb.gmra.mxu2 %vm578_vm2, %v754_v4 }
 0x341   : > { %2119 = vmatmul.msk.bf16.vlgmr.msra.gmra.mxu2 %vm476_vm1, %v849_v61 }
 0x36b   : > { %v720_v6 = vpop.f32.mrf.mxu3 }
 0x36c   : > { %v777_v7 = vpack.c.bf16 %v720_v6, %v720_v6 }
 0x36e   : > { %v3016_v59 = vunpack.c.l.b16 %v777_v7  ;;  %v2201_v7 = vunpack.c.l.bf16 %v2240_v1 }
 0x373   : > { %v722_v8 = vpop.f32.mrf.mxu3 }
 0x374   : > { %v778_v9 = vpack.c.bf16 %v722_v8, %v722_v8 }
 0x376   : > { %v3018_v55 = vunpack.c.l.b16 %v778_v9 }
 0x378   : > { %v1751_v11 = vpack.c.b16 %v3018_v55, %v3016_v59 }
 0x37b   : > { %v819_v13 = vpop.f32.mrf.mxu3 }
 0x37c   : > { %v3022_v14 = vadd.f32 %v2189_v12, %v819_v13 }
 0x37e   : > { %v896_v15 = vsel %vm578_vm2, %v3022_v14, -inf }
 0x37f   : > { %897 = vmax.xlane.f32.xlu1 %v896_v15 }
 0x383   : > { %v821_v30 = vpop.f32.mrf.mxu3 }
 0x384   : > { %v3036_v33 = vadd.f32 %v2190_v27, %v821_v30 }
 0x386   : > { %v899_v40 = vsel %vm578_vm2, %v3036_v33, -inf }
 0x389   : > { %v745_v16 = vpop.f32.mrf.mxu1 }
 0x38a   : > { %v779_v17 = vpack.c.bf16 %v745_v16, %v745_v16 }
 0x38c   : > { %v3026_v21 = vunpack.c.l.b16 %v779_v17 }
 0x391   : > { %v747_v18 = vpop.f32.mrf.mxu1 }
 0x392   : > { %v780_v19 = vpack.c.bf16 %v747_v18, %v747_v18 }
 0x394   : > { %v3028_v22 = vunpack.c.l.b16 %v780_v19 }
 0x396   : > { %v1752_v23 = vpack.c.b16 %v3028_v22, %v3026_v21 }
 0x399   : > { %v843_v25 = vpop.f32.mrf.mxu1 }
 0x39a   : > { %v3032_v26 = vadd.f32 %v2193_v24, %v843_v25 }
 0x39c   : > { %v902_v29 = vsel %vm578_vm2, %v3032_v26, -inf }
 0x39d   : > { %903 = vmax.xlane.f32.xlu2 %v902_v29 }
 0x3a1   : > { %v845_v34 = vpop.f32.mrf.mxu1 }
 0x3a2   : > { %v3038_v36 = vadd.f32 %v2194_v31, %v845_v34 }
 0x3a4   : > { %v695_v37 = vpop.f32.mrf.mxu2  ;;  %v905_v38 = vsel %vm578_vm2, %v3038_v36, -inf }
 0x3a5   : > { %906 = vmax.xlane.f32.xlu1 %v905_v38  ;;  %900 = vmax.xlane.f32.xlu2 %v899_v40  ;;  %v775_v41 = vpack.c.bf16 %v695_v37, %v695_v37 }
 0x3a7   : > { %v3044_v45 = vunpack.c.l.b16 %v775_v41 }
 0x3ac   : > { %v697_v43 = vpop.f32.mrf.mxu2 }
 0x3ad   : > { %v776_v44 = vpack.c.bf16 %v697_v43, %v697_v43  ;;  %v891_v61 = vpop.f32.mrf.mxu3 }
 0x3ae   : > { %v3063_v8 = vadd.f32 %v2201_v7, %v891_v61 }
 0x3af   : > { %v3046_v47 = vunpack.c.l.b16 %v776_v44 }
 0x3b0   : > { %v914_v9 = vsel %vm578_vm2, %v3063_v8, -inf }
 0x3b1   : > { %v1750_v48 = vpack.c.b16 %v3046_v47, %v3044_v45 }
 0x3b4   : > { %v770_v46 = vpop.f32.mrf.mxu2 }
 0x3b5   : > { %v781_v49 = vpack.c.bf16 %v770_v46, %v770_v46  ;;  %v893_v5 = vpop.f32.mrf.mxu3 }
 0x3b6   : > { %v894_v4 = vadd.f32 %v2202_v2, %v893_v5 }
 0x3b7   : > { %v3052_v53 = vunpack.c.l.b16 %v781_v49 }
 0x3b8   : > { %v917_v6 = vsel %vm578_vm2, %v894_v4, -inf }
 0x3bc   : > { %v772_v50 = vpop.f32.mrf.mxu2 }
 0x3bd   : > { %v782_v51 = vpack.c.bf16 %v772_v50, %v772_v50  ;;  %1047 = vrot.lane.b32.xlu2 %v2921_v42, %s2714_s11 }
 0x3bf   : > { %v3054_v54 = vunpack.c.l.b16 %v782_v51 }
 0x3c1   : > { %v1753_v56 = vpack.c.b16 %v3054_v54, %v3052_v53 }
 0x3c4   : > { %v867_v58 = vpop.f32.mrf.mxu2 }
 0x3c5   : > { %v868_v60 = vadd.f32 %v2197_v57, %v867_v58 }
 0x3c7   : > { %v908_v35 = vsel %vm578_vm2, %v868_v60, -inf }
 0x3c8   : > { %909 = vmax.xlane.f32.xlu0 %v908_v35 }
 0x3cc   : > { %v869_v63 = vpop.f32.mrf.mxu2 }
 0x3cd   : > { %v870_v0 = vadd.f32 %v2198_v62, %v869_v63 }
 0x3cf   : > { %v911_v3 = vsel %vm578_vm2, %v870_v0, -inf }
 0x3d0   : > { %912 = vmax.xlane.f32.xlu1 %v911_v3 }
 0x3d8   : > { %918 = vmax.xlane.f32.xlu1 %v917_v6 }
 0x3dc   : > { %1119 = vrot.lane.b32.xlu0 %v2912_v32, %s2715_s18 }
 0x3e6   : > { %915 = vmax.xlane.f32.xlu2 %v914_v9 }
 0x3f1   : > { %1022 = vrot.lane.b32.xlu1 %v2910_v28, %s2714_s11 }
 0x3f2   : > { %v898_v10 = vpop.xlane.xlu1 %897 }
 0x3f3   : > { %v920_v12 = vsub.f32 %v3022_v14, %v898_v10 }
 0x3f5   : > { %v928_v13 = vmul.f32 1.442695, %v920_v12 }
 0x3f7   : > { %2397 = vpow2.f32 %v928_v13 }
 0x3fd   : > { %v3072_v15 = vpop.eup %2397 }
 0x3fe   : > { %1117 = vrot.lane.b32.xlu2 %v2912_v32, %s2716_s28  ;;  %v944_v16 = vsel %vm578_vm2, %v3072_v15, 0.0 }
 0x406   : > { %945 = vadd.xlane.f32.xlu0 %v944_v16  ;;  %1167 = vrot.lane.b32.xlu2 %v2921_v42, %s2715_s18 }
 0x40e   : > { %1143 = vrot.lane.b32.xlu2 %v2910_v28, %s2715_s18 }
 0x410   : > { %v904_v17 = vpop.xlane.xlu2 %903 }
 0x411   : > { %v922_v14 = vsub.f32 %v3032_v26, %v904_v17 }
 0x413   : > { %v932_v18 = vmul.f32 1.442695, %v922_v14 }
 0x415   : > { %2399 = vpow2.f32 %v932_v18 }
 0x416   : > { %1072 = vrot.lane.b32.xlu2 %v2917_v39, %s2714_s11  ;;  %s1946_s11 = scalar_lea.hbm %s3473_s6, %s2170_s29 }
 0x418   : > { %v901_v19 = vpop.xlane.xlu2 %900  ;;  %v907_v30 = vpop.xlane.xlu1 %906 }
 0x419   : > { %v921_v27 = vsub.f32 %v3036_v33, %v901_v19  ;;  %v923_v26 = vsub.f32 %v3038_v36, %v907_v30 }
 0x41b   : > { %v3083_v20 = vpop.eup %2399  ;;  %v930_v29 = vmul.f32 1.442695, %v921_v27  ;;  %v934_v31 = vmul.f32 1.442695, %v923_v26 }
 0x41c   : > { %v950_v24 = vsel %vm578_vm2, %v3083_v20, 0.0 }
 0x41d   : > { %951 = vadd.xlane.f32.xlu0 %v950_v24  ;;  %2401 = vpow2.f32 %v930_v29 }
 0x41e   : > { %2403 = vpow2.f32 %v934_v31 }
 0x420   : > { %v1048_v25 = vpop.permute.xlu2 %1047 }
 0x421   : > { %1060 = vmatpush.bf16.msrb.mxu2 %v1048_v25 }
 0x423   : > { %v3089_v34 = vpop.eup %2401 }
 0x424   : > { %v947_v41 = vsel %vm578_vm2, %v3089_v34, 0.0  ;;  %v3093_v43 = vpop.eup %2403 }
 0x425   : > { %v953_v49 = vsel %vm578_vm2, %v3093_v43, 0.0 }
 0x43b   : > { %v910_v37 = vpop.xlane.xlu0 %909 }
 0x43c   : > { %v924_v38 = vsub.f32 %v868_v60, %v910_v37 }
 0x43e   : > { %v936_v40 = vmul.f32 1.442695, %v924_v38 }
 0x43f   : > { %948 = vadd.xlane.f32.xlu2 %v947_v41 }
 0x440   : > { %2405 = vpow2.f32 %v936_v40 }
 0x443   : > { %v913_v33 = vpop.xlane.xlu1 %912 }
 0x444   : > { %v925_v44 = vsub.f32 %v870_v0, %v913_v33 }
 0x446   : > { %v3095_v46 = vpop.eup %2405  ;;  %v938_v36 = vmul.f32 1.442695, %v925_v44 }
 0x447   : > { %954 = vadd.xlane.f32.xlu2 %v953_v49  ;;  %v956_v50 = vsel %vm578_vm2, %v3095_v46, 0.0 }
 0x448   : > { %2407 = vpow2.f32 %v938_v36  ;;  %957 = vadd.xlane.f32.xlu0 %v956_v50 }
 0x44b   : > { %v919_v51 = vpop.xlane.xlu1 %918 }
 0x44c   : > { %v927_v52 = vsub.f32 %v894_v4, %v919_v51 }
 0x44e   : > { %v3101_v57 = vpop.eup %2407  ;;  %v942_v58 = vmul.f32 1.442695, %v927_v52  ;;  %v1120_v60 = vpop.permute.xlu0 %1119 }
 0x44f   : > { %v1125_v61 = vsel %vm476_vm1, %v1120_v60, 0  ;;  %v959_v35 = vsel %vm578_vm2, %v3101_v57, 0.0 }
 0x450   : > { %2409 = vpow2.f32 %v942_v58  ;;  %960 = vadd.xlane.f32.xlu2 %v959_v35  ;;  %1134 = vmatpush.bf16.xpose.msra.mxu0 %v1125_v61 }
 0x456   : > { %v3106_v62 = vpop.eup %2409 }
 0x457   : > { %v965_v63 = vsel %vm578_vm2, %v3106_v62, 0.0 }
 0x458   : > { %966 = vadd.xlane.f32.xlu0 %v965_v63 }
 0x459   : > { %v916_v0 = vpop.xlane.xlu2 %915 }
 0x45a   : > { %v926_v1 = vsub.f32 %v3063_v8, %v916_v0 }
 0x45c   : > { %v940_v2 = vmul.f32 1.442695, %v926_v1 }
 0x45e   : > { %2411 = vpow2.f32 %v940_v2 }
 0x461   : > { %v1118_v3 = vpop.permute.xlu2 %1117 }
 0x463   : > { %v1023_v5 = vpop.permute.xlu1 %1022 }
 0x464   : > { %v3111_v4 = vpop.eup %2411  ;;  %1035 = vmatpush.bf16.msrb.mxu1 %v1023_v5 }
 0x465   : > { %v962_v6 = vsel %vm578_vm2, %v3111_v4, 0.0 }
 0x466   : > { %963 = vadd.xlane.f32.xlu1 %v962_v6 }
 0x468   : > { %1141 = vrot.lane.b32.xlu2 %v2910_v28, %s2716_s28 }
 0x469   : > { %v1168_v7 = vpop.permute.xlu2 %1167 }
 0x46a   : > { %v1173_v9 = vsel %vm476_vm1, %v1168_v7, 0 }
 0x46b   : > { %1182 = vmatpush.bf16.xpose.msra.mxu2 %v1173_v9 }
 0x46c   : > { %1191 = vrot.lane.b32.xlu0 %v2917_v39, %s2715_s18  ;;  %s1947_s18 = sshll.u32 %s3395_s4, 4  ;;  %s1948_s18 = int_to_ptr.vmem [resolvable:$true] %s1947_s18 }
 0x470   : > { %1189 = vrot.lane.b32.xlu2 %v2917_v39, %s2716_s28 }
 0x471   : > { %v1144_v8 = vpop.permute.xlu2 %1143 }
 0x472   : > { %v1149_v10 = vsel %vm476_vm1, %v1144_v8, 0 }
 0x473   : > { %1158 = vmatpush.bf16.xpose.msra.mxu1 %v1149_v10 }
 0x474   : > { %1314 = vrot.lane.b32.xlu0 %v2912_v32, %s2717_s9 }
 0x479   : > { %v1073_v12 = vpop.permute.xlu2 %1072  ;;  %v946_v13 = vpop.xlane.xlu0 %945 }
 0x47a   : > { %1085 = vmatpush.bf16.msrb.mxu3 %v1073_v12  ;;  %2413 = vrcp.f32 %v946_v13 }
 0x47f   : > { %1165 = vrot.lane.b32.xlu1 %v2921_v42, %s2716_s28  ;;  %s1949_s28 = sshll.u32 %s1946_s11, 4  ;;  %s1950_s28 = int_to_ptr.hbm [resolvable:$true] %s1949_s28 }
 0x480   : > { %v2414_v14 = vpop.eup %2413 }
 0x481   : > { %v976_v18 = vmul.f32 %v2414_v14, %v3072_v15 }
 0x483   : > { %v984_v24 = vpack.c.bf16 %v976_v18, %v976_v18 }
 0x485   : > { %v994_v31 = vunpack.c.l.b16 %v984_v24 }
 0x490   : > { %v952_v16 = vpop.xlane.xlu0 %951 }
 0x4b2   : > { %v949_v17 = vpop.xlane.xlu2 %948 }
 0x4b3   : > { %2415 = vrcp.f32 %v949_v17 }
 0x4b4   : > { %2417 = vrcp.f32 %v952_v16 }
 0x4b9   : > { %v2416_v19 = vpop.eup %2415 }
 0x4ba   : > { %v977_v25 = vmul.f32 %v2416_v19, %v3089_v34  ;;  %v955_v27 = vpop.xlane.xlu2 %954  ;;  %v2418_v29 = vpop.eup %2417 }
 0x4bb   : > { %2419 = vrcp.f32 %v955_v27  ;;  %v958_v30 = vpop.xlane.xlu0 %957  ;;  %v978_v37 = vmul.f32 %v2418_v29, %v3083_v20 }
 0x4bc   : > { %v985_v26 = vpack.c.bf16 %v977_v25, %v977_v25  ;;  %2421 = vrcp.f32 %v958_v30 }
 0x4bd   : > { %v986_v33 = vpack.c.bf16 %v978_v37, %v978_v37 }
 0x4be   : > { %v995_v38 = vunpack.c.l.b16 %v985_v26 }
 0x4bf   : > { %v1019_v49 = vunpack.c.l.b16 %v986_v33  ;;  %v2241_v33 = vld [vmem:[#allocation5 + $0x48] sm:$0xff]  }
 0x4c0   : > { %v996_v40 = vpack.c.b16 %v995_v38, %v994_v31 }
 0x4c1   : > { %v2420_v41 = vpop.eup %2419 }
 0x4c2   : > { %v979_v44 = vmul.f32 %v2420_v41, %v3093_v43  ;;  %2121 = vmatmul.msk.bf16.vlgmr.msrb.gmra.mxu0 %vm578_vm2, %v996_v40  ;;  %v2422_v36 = vpop.eup %2421 }
 0x4c3   : > { %v961_v15 = vpop.xlane.xlu2 %960  ;;  %v980_v51 = vmul.f32 %v2422_v36, %v3095_v46 }
 0x4c4   : > { %v987_v34 = vpack.c.bf16 %v979_v44, %v979_v44  ;;  %2423 = vrcp.f32 %v961_v15 }
 0x4c5   : > { %v988_v20 = vpack.c.bf16 %v980_v51, %v980_v51 }
 0x4c6   : > { %v1020_v50 = vunpack.c.l.b16 %v987_v34 }
 0x4c7   : > { %v1044_v35 = vunpack.c.l.b16 %v988_v20 }
 0x4c8   : > { %v1021_v52 = vpack.c.b16 %v1020_v50, %v1019_v49  ;;  %v2209_v50 = vunpack.c.l.bf16 %v2241_v33 }
 0x4ca   : > { %v2424_v58 = vpop.eup %2423  ;;  %2122 = vmatmul.msk.bf16.vlgmr.msrb.gmra.mxu1 %vm578_vm2, %v1021_v52 }
 0x4cb   : > { %v981_v60 = vmul.f32 %v2424_v58, %v3101_v57  ;;  %v967_v0 = vpop.xlane.xlu0 %966  ;;  %v1142_v1 = vpop.permute.xlu2 %1141 }
 0x4cc   : > { %2425 = vrcp.f32 %v967_v0 }
 0x4cd   : > { %v989_v61 = vpack.c.bf16 %v981_v60, %v981_v60 }
 0x4cf   : > { %v1045_v43 = vunpack.c.l.b16 %v989_v61 }
 0x4d1   : > { %v1046_v63 = vpack.c.b16 %v1045_v43, %v1044_v35  ;;  %v2210_v43 = vunpack.c.h.bf16 %v2241_v33 }
 0x4d2   : > { %2125 = vmatmul.msk.bf16.vlgmr.msra.gmra.mxu0 %vm476_vm1, %v1118_v3  ;;  %v2426_v46 = vpop.eup %2425 }
 0x4d3   : > { %2123 = vmatmul.msk.bf16.vlgmr.msrb.gmra.mxu2 %vm578_vm2, %v1046_v63  ;;  %v983_v5 = vmul.f32 %v2426_v46, %v3106_v62  ;;  %v1190_v62 = vpop.permute.xlu2 %1189 }
 0x4d5   : > { %v991_v9 = vpack.c.bf16 %v983_v5, %v983_v5 }
 0x4d7   : > { %v1070_v10 = vunpack.c.l.b16 %v991_v9 }
 0x4d9   : > { %v964_v2 = vpop.xlane.xlu1 %963 }
 0x4da   : > { %2427 = vrcp.f32 %v964_v2  ;;  %2126 = vmatmul.msk.bf16.vlgmr.msra.gmra.mxu1 %vm476_vm1, %v1142_v1 }
 0x4de   : > { %v1192_v6 = vpop.permute.xlu0 %1191 }
 0x4df   : > { %v1197_v57 = vsel %vm476_vm1, %v1192_v6, 0 }
 0x4e0   : > { %v2428_v7 = vpop.eup %2427  ;;  %1206 = vmatpush.bf16.xpose.msra.mxu3 %v1197_v57 }
 0x4e1   : > { %v982_v8 = vmul.f32 %v2428_v7, %v3111_v4  ;;  %v2204_v4 = vld [vmem:[#allocation5 + $0x40] sm:$0xff]  }
 0x4e2   : > { %v2205_v26 = vunpack.c.l.bf16 %v2204_v4  ;;  %v2206_v49 = vunpack.c.h.bf16 %v2204_v4 }
 0x4e3   : > { %v990_v3 = vpack.c.bf16 %v982_v8, %v982_v8  ;;  %v2242_v8 = vld [vmem:[#allocation5 + $0x50] sm:$0xff]  }
 0x4e4   : > { %v2214_v4 = vunpack.c.h.bf16 %v2242_v8 }
 0x4e5   : > { %v1069_v12 = vunpack.c.l.b16 %v990_v3  ;;  %v2213_v3 = vunpack.c.l.bf16 %v2242_v8 }
 0x4e6   : > { %v1315_v13 = vpop.permute.xlu0 %1314 }
 0x4e7   : > { %v1071_v16 = vpack.c.b16 %v1070_v10, %v1069_v12  ;;  %1327 = vmatpush.bf16.msrb.mxu0 %v1315_v13 }
 0x4e9   : > { %2124 = vmatmul.msk.bf16.vlgmr.msrb.gmra.mxu3 %vm578_vm2, %v1071_v16 }
 0x4f1   : > { %v1166_v17 = vpop.permute.xlu1 %1165 }
 0x4f2   : > { %2127 = vmatmul.msk.bf16.vlgmr.msra.gmra.mxu2 %vm476_vm1, %v1166_v17 }
 0x4f9   : > { %2128 = vmatmul.msk.bf16.vlgmr.msra.gmra.mxu3 %vm476_vm1, %v1190_v62  ;;  %v2243_v62 = vld [vmem:[#allocation5 + $0x58] sm:$0xff]  }
 0x53f   : > { %v1012_v14 = vpop.f32.mrf.mxu0 }
 0x540   : > { %v1092_v18 = vpack.c.bf16 %v1012_v14, %v1012_v14 }
 0x542   : > { %v3144_v27 = vunpack.c.l.b16 %v1092_v18 }
 0x547   : > { %v1014_v19 = vpop.f32.mrf.mxu0  ;;  %v1037_v24 = vpop.f32.mrf.mxu1 }
 0x548   : > { %v1093_v25 = vpack.c.bf16 %v1014_v19, %v1014_v19  ;;  %v1094_v31 = vpack.c.bf16 %v1037_v24, %v1037_v24 }
 0x54a   : > { %v3146_v29 = vunpack.c.l.b16 %v1093_v25  ;;  %v3152_v44 = vunpack.c.l.b16 %v1094_v31  ;;  %v2217_v25 = vunpack.c.l.bf16 %v2243_v62 }
 0x54c   : > { %v1770_v30 = vpack.c.b16 %v3146_v29, %v3144_v27 }
 0x54f   : > { %v1039_v37 = vpop.f32.mrf.mxu1  ;;  %v1136_v38 = vpop.f32.mrf.mxu0 }
 0x550   : > { %v1095_v40 = vpack.c.bf16 %v1039_v37, %v1039_v37  ;;  %v3150_v41 = vadd.f32 %v2205_v26, %v1136_v38 }
 0x552   : > { %v3154_v15 = vunpack.c.l.b16 %v1095_v40  ;;  %v1213_v36 = vsel %vm578_vm2, %v3150_v41, -inf }
 0x553   : > { %1214 = vmax.xlane.f32.xlu2 %v1213_v36  ;;  %v2218_v36 = vunpack.c.h.bf16 %v2243_v62 }
 0x554   : > { %v1771_v34 = vpack.c.b16 %v3154_v15, %v3152_v44 }
 0x556   : > { %v1062_v51 = vpop.f32.mrf.mxu2 }
 0x557   : > { %v1138_v52 = vpop.f32.mrf.mxu0  ;;  %v1160_v58 = vpop.f32.mrf.mxu1  ;;  %v1096_v63 = vpack.c.bf16 %v1062_v51, %v1062_v51 }
 0x558   : > { %v3160_v20 = vadd.f32 %v2206_v49, %v1138_v52  ;;  %v3162_v60 = vadd.f32 %v2209_v50, %v1160_v58 }
 0x559   : > { %v3168_v5 = vunpack.c.l.b16 %v1096_v63 }
 0x55a   : > { %v1216_v61 = vsel %vm578_vm2, %v3160_v20, -inf  ;;  %v1219_v35 = vsel %vm578_vm2, %v3162_v60, -inf }
 0x55b   : > { %1217 = vmax.xlane.f32.xlu0 %v1216_v61  ;;  %1220 = vmax.xlane.f32.xlu1 %v1219_v35 }
 0x55e   : > { %v1064_v0 = vpop.f32.mrf.mxu2 }
 0x55f   : > { %v1097_v1 = vpack.c.bf16 %v1064_v0, %v1064_v0  ;;  %v1162_v2 = vpop.f32.mrf.mxu1 }
 0x560   : > { %v1163_v46 = vadd.f32 %v2210_v43, %v1162_v2 }
 0x561   : > { %v3170_v6 = vunpack.c.l.b16 %v1097_v1 }
 0x562   : > { %v1222_v57 = vsel %vm578_vm2, %v1163_v46, -inf }
 0x563   : > { %v1772_v7 = vpack.c.b16 %v3170_v6, %v3168_v5  ;;  %1223 = vmax.xlane.f32.xlu2 %v1222_v57 }
 0x56c   : > { %v1087_v9 = vpop.f32.mrf.mxu3 }
 0x56d   : > { %v1098_v10 = vpack.c.bf16 %v1087_v9, %v1087_v9 }
 0x56f   : > { %v3177_v14 = vunpack.c.l.b16 %v1098_v10 }
 0x574   : > { %v1089_v12 = vpop.f32.mrf.mxu3 }
 0x575   : > { %v1099_v13 = vpack.c.bf16 %v1089_v12, %v1089_v12  ;;  %v1184_v16 = vpop.f32.mrf.mxu2 }
 0x576   : > { %v3175_v17 = vadd.f32 %v2213_v3, %v1184_v16 }
 0x577   : > { %v3179_v18 = vunpack.c.l.b16 %v1099_v13 }
 0x578   : > { %v1225_v19 = vsel %vm578_vm2, %v3175_v17, -inf }
 0x579   : > { %v1773_v24 = vpack.c.b16 %v3179_v18, %v3177_v14  ;;  %1226 = vmax.xlane.f32.xlu0 %v1225_v19 }
 0x57c   : > { %v1208_v26 = vpop.f32.mrf.mxu3 }
 0x57d   : > { %v1209_v31 = vadd.f32 %v2217_v25, %v1208_v26  ;;  %v1186_v37 = vpop.f32.mrf.mxu2 }
 0x57e   : > { %v1187_v38 = vadd.f32 %v2214_v4, %v1186_v37 }
 0x57f   : > { %v1231_v40 = vsel %vm578_vm2, %v1209_v31, -inf }
 0x580   : > { %1232 = vmax.xlane.f32.xlu1 %v1231_v40  ;;  %v1228_v33 = vsel %vm578_vm2, %v1187_v38, -inf }
 0x581   : > { %1229 = vmax.xlane.f32.xlu2 %v1228_v33 }
 0x584   : > { %v1210_v49 = vpop.f32.mrf.mxu3 }
 0x585   : > { %v3187_v50 = vadd.f32 %v2218_v36, %v1210_v49 }
 0x587   : > { %v1234_v51 = vsel %vm578_vm2, %v3187_v50, -inf }
 0x588   : > { %1235 = vmax.xlane.f32.xlu0 %v1234_v51 }
 0x599   : > { %1339 = vrot.lane.b32.xlu1 %v2910_v28, %s2717_s9 }
 0x59c   : > { %1434 = vrot.lane.b32.xlu0 %v2912_v32, %s2718_s13 }
 0x5a1   : > { %1460 = vrot.lane.b32.xlu1 %v2910_v28, %s2719_s16 }
 0x5a4   : > { %1364 = vrot.lane.b32.xlu0 %v2921_v42, %s2717_s9 }
 0x5a9   : > { %1484 = vrot.lane.b32.xlu1 %v2921_v42, %s2719_s16 }
 0x5b1   : > { %1458 = vrot.lane.b32.xlu1 %v2910_v28, %s2718_s13 }
 0x5b9   : > { %1389 = vrot.lane.b32.xlu1 %v2917_v39, %s2717_s9  ;;  %s1933_s9 = scalar_lea.sflag [#allocation4], %s2887_s14 }
 0x5c6   : > { %v1215_v52 = vpop.xlane.xlu2 %1214 }
 0x5c7   : > { %v1237_v58 = vsub.f32 %v3150_v41, %v1215_v52 }
 0x5c9   : > { %v1245_v61 = vmul.f32 1.442695, %v1237_v58 }
 0x5cb   : > { %2429 = vpow2.f32 %v1245_v61 }
 0x5ce   : > { %v1218_v35 = vpop.xlane.xlu0 %1217  ;;  %v1221_v10 = vpop.xlane.xlu1 %1220 }
 0x5cf   : > { %v1238_v63 = vsub.f32 %v3160_v20, %v1218_v35 }
 0x5d1   : > { %v3206_v43 = vpop.eup %2429  ;;  %v1247_v1 = vmul.f32 1.442695, %v1238_v63 }
 0x5d2   : > { %v1261_v0 = vsel %vm578_vm2, %v3206_v43, 0.0 }
 0x5d3   : > { %1262 = vadd.xlane.f32.xlu2 %v1261_v0  ;;  %2431 = vpow2.f32 %v1247_v1 }
 0x5d6   : > { %v1224_v2 = vpop.xlane.xlu2 %1223 }
 0x5d7   : > { %v1240_v57 = vsub.f32 %v1163_v46, %v1224_v2 }
 0x5d9   : > { %v1251_v9 = vmul.f32 1.442695, %v1240_v57  ;;  %v3211_v8 = vpop.eup %2431 }
 0x5da   : > { %v1264_v41 = vsel %vm578_vm2, %v3211_v8, 0.0 }
 0x5db   : > { %2433 = vpow2.f32 %v1251_v9 }
 0x5e1   : > { %v3215_v3 = vpop.eup %2433 }
 0x5e2   : > { %v1270_v20 = vsel %vm578_vm2, %v3215_v3, 0.0 }
 0x5e3   : > { %1265 = vadd.xlane.f32.xlu1 %v1264_v41 }
 0x5eb   : > { %1436 = vrot.lane.b32.xlu2 %v2912_v32, %s2719_s16  ;;  %1271 = vadd.xlane.f32.xlu1 %v1270_v20 }
 0x5ec   : > { %v1227_v4 = vpop.xlane.xlu0 %1226 }
 0x5ed   : > { %v1241_v36 = vsub.f32 %v3175_v17, %v1227_v4 }
 0x5ef   : > { %v1253_v51 = vmul.f32 1.442695, %v1241_v36 }
 0x5f3   : > { %v1233_v12 = vpop.xlane.xlu1 %1232 }
 0x5f4   : > { %v1243_v46 = vsub.f32 %v1209_v31, %v1233_v12  ;;  %v1230_v13 = vpop.xlane.xlu2 %1229  ;;  %v1239_v31 = vsub.f32 %v3162_v60, %v1221_v10 }
 0x5f5   : > { %v1242_v16 = vsub.f32 %v1187_v38, %v1230_v13 }
 0x5f6   : > { %v1257_v62 = vmul.f32 1.442695, %v1243_v46  ;;  %v1249_v38 = vmul.f32 1.442695, %v1239_v31 }
 0x5f7   : > { %v1255_v19 = vmul.f32 1.442695, %v1242_v16 }
 0x5f8   : > { %2435 = vpow2.f32 %v1257_v62 }
 0x5f9   : > { %2437 = vpow2.f32 %v1255_v19 }
 0x5fa   : > { %2439 = vpow2.f32 %v1249_v38 }
 0x5fb   : > { %v1236_v33 = vpop.xlane.xlu0 %1235  ;;  %2441 = vpow2.f32 %v1253_v51 }
 0x5fc   : > { %v1244_v61 = vsub.f32 %v3187_v50, %v1236_v33 }
 0x5fe   : > { %v3221_v25 = vpop.eup %2435  ;;  %v1259_v60 = vmul.f32 1.442695, %v1244_v61 }
 0x5ff   : > { %v3223_v26 = vpop.eup %2437  ;;  %v1279_v37 = vsel %vm578_vm2, %v3221_v25, 0.0 }
 0x600   : > { %1280 = vadd.xlane.f32.xlu0 %v1279_v37  ;;  %v1276_v40 = vsel %vm578_vm2, %v3223_v26, 0.0  ;;  %v2440_v58 = vpop.eup %2439  ;;  %2443 = vpow2.f32 %v1259_v60 }
 0x601   : > { %1277 = vadd.xlane.f32.xlu1 %v1276_v40  ;;  %v1267_v63 = vsel %vm578_vm2, %v2440_v58, 0.0  ;;  %v2442_v1 = vpop.eup %2441 }
 0x602   : > { %v1273_v50 = vsel %vm578_vm2, %v2442_v1, 0.0 }
 0x606   : > { %v3240_v9 = vpop.eup %2443 }
 0x607   : > { %v1282_v20 = vsel %vm578_vm2, %v3240_v9, 0.0 }
 0x60b   : > { %v1340_v49 = vpop.permute.xlu1 %1339 }
 0x60c   : > { %1352 = vmatpush.bf16.msrb.mxu1 %v1340_v49 }
 0x60e   : > { %v1435_v52 = vpop.permute.xlu0 %1434 }
 0x613   : > { %v1461_v35 = vpop.permute.xlu1 %1460 }
 0x614   : > { %v1466_v0 = vsel %vm476_vm1, %v1461_v35, 0  ;;  %1268 = vadd.xlane.f32.xlu2 %v1267_v63  ;;  %1508 = vrot.lane.b32.xlu0 %v2917_v39, %s2719_s16 }
 0x615   : > { %1475 = vmatpush.bf16.xpose.msra.mxu1 %v1466_v0 }
 0x616   : > { %v1365_v17 = vpop.permute.xlu0 %1364 }
 0x617   : > { %1377 = vmatpush.bf16.msrb.mxu2 %v1365_v17 }
 0x61a   : > { %1482 = vrot.lane.b32.xlu1 %v2921_v42, %s2718_s13 }
 0x61b   : > { %v1485_v2 = vpop.permute.xlu1 %1484 }
 0x61c   : > { %v1490_v57 = vsel %vm476_vm1, %v1485_v2, 0  ;;  %1274 = vadd.xlane.f32.xlu2 %v1273_v50 }
 0x61d   : > { %1499 = vmatpush.bf16.xpose.msra.mxu2 %v1490_v57 }
 0x623   : > { %v3242_v41 = vpop.permute.xlu1 %1458 }
 0x624   : > { %1283 = vadd.xlane.f32.xlu2 %v1282_v20 }
 0x62b   : > { %v1390_v10 = vpop.permute.xlu1 %1389 }
 0x62c   : > { %1402 = vmatpush.bf16.msrb.mxu3 %v1390_v10 }
 0x63c   : > { %1506 = vrot.lane.b32.xlu2 %v2917_v39, %s2718_s13  ;;  %s2627_s13 = sshra.s32 %s1950_s28, 4  ;;  %s2628_s13 = int_to_ptr.hbm [resolvable:$true] %s2627_s13 }
 0x63d   : > { %s2629_s24 = scalar_lea.hbm %s2628_s13, 64  ;;  %p2634_p10 = scmp.lt.s32.totalorder %s2628_s13, %s3473_s6 }
 0x63e   : > { %p2630_p1 = scmp.ne.s32.totalorder %s2628_s13, %s2629_s24 }
 0x640   : > { %p2631_p4 = pnand %p2630_p1, %p2864_p5 }
 0x642   : > { %p2632_p8 = pneg %p2631_p4 }
 0x646   : > { %v1263_v12 = vpop.xlane.xlu2 %1262 }
 0x647   : > { %2445 = vrcp.f32 %v1263_v12 }
 0x64d   : > { %v2446_v62 = vpop.eup %2445 }
 0x64e   : > { %v1437_v46 = vpop.permute.xlu2 %1436  ;;  %v1293_v19 = vmul.f32 %v2446_v62, %v3206_v43 }
 0x64f   : > { %v1442_v13 = vsel %vm476_vm1, %v1437_v46, 0 }
 0x650   : > { %1451 = vmatpush.bf16.xpose.msra.mxu0 %v1442_v13  ;;  %v1301_v37 = vpack.c.bf16 %v1293_v19, %v1293_v19 }
 0x652   : > { %v1311_v38 = vunpack.c.l.b16 %v1301_v37 }
 0x656   : > { %v1266_v16 = vpop.xlane.xlu1 %1265 }
 0x657   : > { %2447 = vrcp.f32 %v1266_v16 }
 0x65d   : > { %v2448_v4 = vpop.eup %2447 }
 0x65e   : > { %v1294_v40 = vmul.f32 %v2448_v4, %v3211_v8  ;;  %v1272_v51 = vpop.xlane.xlu1 %1271 }
 0x65f   : > { %2449 = vrcp.f32 %v1272_v51 }
 0x660   : > { %v1302_v31 = vpack.c.bf16 %v1294_v40, %v1294_v40 }
 0x662   : > { %v1312_v33 = vunpack.c.l.b16 %v1302_v31 }
 0x664   : > { %v1313_v36 = vpack.c.b16 %v1312_v33, %v1311_v38 }
 0x665   : > { %v2450_v0 = vpop.eup %2449 }
 0x666   : > { %2129 = vmatmul.msk.bf16.vlgmr.msrb.gmra.mxu0 %vm578_vm2, %v1313_v36  ;;  %v1296_v8 = vmul.f32 %v2450_v0, %v3215_v3  ;;  %v2220_v0 = vld [vmem:[#allocation5 + $0x60] sm:$0xff]  }
 0x668   : > { %v1304_v17 = vpack.c.bf16 %v1296_v8, %v1296_v8 }
 0x66a   : > { %v1337_v20 = vunpack.c.l.b16 %v1304_v17 }
 0x673   : > { %v1281_v49 = vpop.xlane.xlu0 %1280 }
 0x674   : > { %v1278_v35 = vpop.xlane.xlu1 %1277 }
 0x676   : > { %2133 = vmatmul.msk.bf16.vlgmr.msra.gmra.mxu0 %vm476_vm1, %v1435_v52 }
 0x686   : > { %v1509_v61 = vpop.permute.xlu0 %1508 }
 0x687   : > { %v1514_v63 = vsel %vm476_vm1, %v1509_v61, 0  ;;  %v1269_v43 = vpop.xlane.xlu2 %1268 }
 0x688   : > { %2451 = vrcp.f32 %v1269_v43  ;;  %1523 = vmatpush.bf16.xpose.msra.mxu3 %v1514_v63 }
 0x689   : > { %2453 = vrcp.f32 %v1278_v35 }
 0x68c   : > { %v1483_v61 = vpop.permute.xlu1 %1482 }
 0x68e   : > { %v2452_v60 = vpop.eup %2451 }
 0x68f   : > { %v1295_v2 = vmul.f32 %v2452_v60, %v2440_v58  ;;  %v1275_v50 = vpop.xlane.xlu2 %1274  ;;  %v2454_v57 = vpop.eup %2453 }
 0x690   : > { %2455 = vrcp.f32 %v1275_v50  ;;  %v1298_v10 = vmul.f32 %v2454_v57, %v3223_v26 }
 0x691   : > { %v1303_v52 = vpack.c.bf16 %v1295_v2, %v1295_v2  ;;  %2457 = vrcp.f32 %v1281_v49  ;;  %v2221_v2 = vunpack.c.l.bf16 %v2220_v0 }
 0x692   : > { %v1306_v16 = vpack.c.bf16 %v1298_v10, %v1298_v10 }
 0x693   : > { %v1336_v12 = vunpack.c.l.b16 %v1303_v52  ;;  %v2222_v52 = vunpack.c.h.bf16 %v2220_v0 }
 0x694   : > { %v1362_v37 = vunpack.c.l.b16 %v1306_v16 }
 0x695   : > { %v1338_v46 = vpack.c.b16 %v1337_v20, %v1336_v12 }
 0x696   : > { %v2456_v13 = vpop.eup %2455 }
 0x697   : > { %v1297_v62 = vmul.f32 %v2456_v13, %v2442_v1  ;;  %2130 = vmatmul.msk.bf16.vlgmr.msrb.gmra.mxu1 %vm578_vm2, %v1338_v46  ;;  %v1284_v19 = vpop.xlane.xlu2 %1283  ;;  %v2458_v3 = vpop.eup %2457 }
 0x698   : > { %2459 = vrcp.f32 %v1284_v19  ;;  %v1299_v58 = vmul.f32 %v2458_v3, %v3221_v25  ;;  %v2244_v19 = vld [vmem:[#allocation5 + $0x68] sm:$0xff]  }
 0x699   : > { %v1305_v4 = vpack.c.bf16 %v1297_v62, %v1297_v62 }
 0x69a   : > { %v1307_v33 = vpack.c.bf16 %v1299_v58, %v1299_v58 }
 0x69b   : > { %v1361_v40 = vunpack.c.l.b16 %v1305_v4 }
 0x69c   : > { %v1386_v49 = vunpack.c.l.b16 %v1307_v33 }
 0x69d   : > { %v1363_v31 = vpack.c.b16 %v1362_v37, %v1361_v40  ;;  %v2225_v37 = vunpack.c.l.bf16 %v2244_v19 }
 0x69e   : > { %v2460_v38 = vpop.eup %2459 }
 0x69f   : > { %v1300_v26 = vmul.f32 %v2460_v38, %v3240_v9  ;;  %2131 = vmatmul.msk.bf16.vlgmr.msrb.gmra.mxu2 %vm578_vm2, %v1363_v31  ;;  %v1507_v25 = vpop.permute.xlu2 %1506 }
 0x6a1   : > { %v1308_v36 = vpack.c.bf16 %v1300_v26, %v1300_v26 }
 0x6a3   : > { %v1387_v1 = vunpack.c.l.b16 %v1308_v36  ;;  %v2226_v36 = vunpack.c.h.bf16 %v2244_v19 }
 0x6a5   : > { %v1388_v51 = vpack.c.b16 %v1387_v1, %v1386_v49 }
 0x6a7   : > { %2132 = vmatmul.msk.bf16.vlgmr.msrb.gmra.mxu3 %vm578_vm2, %v1388_v51  ;;  %2134 = vmatmul.msk.bf16.vlgmr.msra.gmra.mxu1 %vm476_vm1, %v3242_v41 }
 0x6af   : > { %2135 = vmatmul.msk.bf16.vlgmr.msra.gmra.mxu2 %vm476_vm1, %v1483_v61 }
 0x6b7   : > { %2136 = vmatmul.msk.bf16.vlgmr.msra.gmra.mxu3 %vm476_vm1, %v1507_v25  ;;  %v2245_v25 = vld [vmem:[#allocation5 + $0x70] sm:$0xff]  }
 0x6e3   : > { %v1329_v35 = vpop.f32.mrf.mxu0 }
 0x6e4   : > { %v1409_v63 = vpack.c.bf16 %v1329_v35, %v1329_v35 }
 0x6e6   : > { %v3265_v8 = vunpack.c.l.b16 %v1409_v63 }
 0x6eb   : > { %v1331_v9 = vpop.f32.mrf.mxu0 }
 0x6ec   : > { %v1410_v43 = vpack.c.bf16 %v1331_v9, %v1331_v9 }
 0x6ee   : > { %v3267_v60 = vunpack.c.l.b16 %v1410_v43 }
 0x6f0   : > { %v1798_v17 = vpack.c.b16 %v3267_v60, %v3265_v8 }
 0x6f3   : > { %v1453_v41 = vpop.f32.mrf.mxu0 }
 0x6f4   : > { %v3271_v50 = vadd.f32 %v2221_v2, %v1453_v41  ;;  %v2229_v2 = vunpack.c.l.bf16 %v2245_v25 }
 0x6f6   : > { %v1530_v57 = vsel %vm578_vm2, %v3271_v50, -inf }
 0x6f7   : > { %1531 = vmax.xlane.f32.xlu1 %v1530_v57 }
 0x6fb   : > { %v1455_v20 = vpop.f32.mrf.mxu0 }
 0x6fc   : > { %v3275_v10 = vadd.f32 %v2222_v52, %v1455_v20 }
 0x6fe   : > { %v1533_v12 = vsel %vm578_vm2, %v3275_v10, -inf }
 0x6ff   : > { %1534 = vmax.xlane.f32.xlu0 %v1533_v12 }
 0x714   : > { %v1354_v46 = vpop.f32.mrf.mxu1 }
 0x715   : > { %v1411_v13 = vpack.c.bf16 %v1354_v46, %v1354_v46  ;;  %v2246_v46 = vld [vmem:[#allocation5 + $0x78] sm:$0xff]  }
 0x717   : > { %v3279_v3 = vunpack.c.l.b16 %v1411_v13 }
 0x71c   : > { %v1356_v16 = vpop.f32.mrf.mxu1 }
 0x71d   : > { %v1412_v62 = vpack.c.bf16 %v1356_v16, %v1356_v16 }
 0x71f   : > { %v3281_v4 = vunpack.c.l.b16 %v1412_v62 }
 0x721   : > { %v1799_v58 = vpack.c.b16 %v3281_v4, %v3279_v3 }
 0x722   : > { %v1379_v40 = vpop.f32.mrf.mxu2 }
 0x723   : > { %v1413_v26 = vpack.c.bf16 %v1379_v40, %v1379_v40  ;;  %v2233_v40 = vunpack.c.l.bf16 %v2246_v46 }
 0x724   : > { %v1477_v31 = vpop.f32.mrf.mxu1 }
 0x725   : > { %v1478_v38 = vadd.f32 %v2225_v37, %v1477_v31  ;;  %v3286_v35 = vunpack.c.l.b16 %v1413_v26  ;;  %v2230_v37 = vunpack.c.h.bf16 %v2245_v25 }
 0x727   : > { %v1536_v33 = vsel %vm578_vm2, %v1478_v38, -inf }
 0x728   : > { %1537 = vmax.xlane.f32.xlu2 %v1536_v33 }
 0x72a   : > { %v1381_v49 = vpop.f32.mrf.mxu2  ;;  %v1404_v1 = vpop.f32.mrf.mxu3 }
 0x72b   : > { %v1414_v51 = vpack.c.bf16 %v1381_v49, %v1381_v49  ;;  %v1415_v41 = vpack.c.bf16 %v1404_v1, %v1404_v1 }
 0x72c   : > { %v1479_v61 = vpop.f32.mrf.mxu1 }
 0x72d   : > { %v3288_v63 = vunpack.c.l.b16 %v1414_v51  ;;  %v1480_v9 = vadd.f32 %v2226_v36, %v1479_v61  ;;  %v3293_v13 = vunpack.c.l.b16 %v1415_v41  ;;  %v2234_v51 = vunpack.c.h.bf16 %v2246_v46 }
 0x72f   : > { %v1800_v43 = vpack.c.b16 %v3288_v63, %v3286_v35  ;;  %v1539_v0 = vsel %vm578_vm2, %v1480_v9, -inf }
 0x730   : > { %1540 = vmax.xlane.f32.xlu1 %v1539_v0 }
 0x732   : > { %v1406_v57 = vpop.f32.mrf.mxu3  ;;  %v1501_v52 = vpop.f32.mrf.mxu2 }
 0x733   : > { %v1416_v20 = vpack.c.bf16 %v1406_v57, %v1406_v57  ;;  %v1502_v12 = vadd.f32 %v2229_v2, %v1501_v52 }
 0x735   : > { %v3295_v16 = vunpack.c.l.b16 %v1416_v20  ;;  %v1542_v19 = vsel %vm578_vm2, %v1502_v12, -inf }
 0x737   : > { %v1801_v62 = vpack.c.b16 %v3295_v16, %v3293_v13  ;;  %v2364_v13 = vld [vmem:[%s3472_s5] ss:$0 sm:$0xff] }
 0x738   : > { %1543 = vmax.xlane.f32.xlu1 %v1542_v19 }
 0x73a   : > { %v1503_v31 = vpop.f32.mrf.mxu2  ;;  %v1525_v33 = vpop.f32.mrf.mxu3 }
 0x73b   : > { %v3300_v26 = vadd.f32 %v2230_v37, %v1503_v31  ;;  %v1526_v36 = vadd.f32 %v2233_v40, %v1525_v33 }
 0x73d   : > { %v1545_v49 = vsel %vm578_vm2, %v3300_v26, -inf  ;;  %v1548_v1 = vsel %vm578_vm2, %v1526_v36, -inf }
 0x73e   : > { %1546 = vmax.xlane.f32.xlu0 %v1545_v49 }
 0x740   : > { %1549 = vmax.xlane.f32.xlu1 %v1548_v1 }
 0x742   : > { %v1527_v61 = vpop.f32.mrf.mxu3 }
 0x743   : > { %v1528_v0 = vadd.f32 %v2234_v51, %v1527_v61 }
 0x745   : > { %v1551_v2 = vsel %vm578_vm2, %v1528_v0, -inf }
 0x746   : > { %1552 = vmax.xlane.f32.xlu2 %v1551_v2 }
 0x75e   : > { %1631 = vrot.lane.b32.xlu2 %v2912_v32, %s2720_s17 }
 0x76a   : > { %v1532_v25 = vpop.xlane.xlu1 %1531 }
 0x76b   : > { %v1554_v41 = vsub.f32 %v3271_v50, %v1532_v25 }
 0x76d   : > { %v1562_v57 = vmul.f32 1.442695, %v1554_v41 }
 0x76f   : > { %2461 = vpow2.f32 %v1562_v57 }
 0x772   : > { %v1535_v52 = vpop.xlane.xlu0 %1534 }
 0x773   : > { %v1555_v20 = vsub.f32 %v3275_v10, %v1535_v52 }
 0x775   : > { %v2462_v19 = vpop.eup %2461  ;;  %v1564_v46 = vmul.f32 1.442695, %v1555_v20 }
 0x776   : > { %v1578_v37 = vsel %vm578_vm2, %v2462_v19, 0.0 }
 0x777   : > { %2463 = vpow2.f32 %v1564_v46  ;;  %1579 = vadd.xlane.f32.xlu0 %v1578_v37 }
 0x77d   : > { %v2464_v40 = vpop.eup %2463 }
 0x77e   : > { %v1581_v31 = vsel %vm578_vm2, %v2464_v40, 0.0 }
 0x77f   : > { %1582 = vadd.xlane.f32.xlu1 %v1581_v31 }
 0x79b   : > { %v1538_v33 = vpop.xlane.xlu2 %1537 }
 0x79c   : > { %v1556_v32 = vsub.f32 %v1478_v38, %v1538_v33 }
 0x79e   : > { %v1566_v49 = vmul.f32 1.442695, %v1556_v32 }
 0x7a0   : > { %2465 = vpow2.f32 %v1566_v49 }
 0x7a3   : > { %v1541_v50 = vpop.xlane.xlu1 %1540 }
 0x7a4   : > { %v1557_v1 = vsub.f32 %v1480_v9, %v1541_v50 }
 0x7a6   : > { %v3312_v51 = vpop.eup %2465  ;;  %v1568_v61 = vmul.f32 1.442695, %v1557_v1 }
 0x7a7   : > { %v1584_v10 = vsel %vm578_vm2, %v3312_v51, 0.0 }
 0x7a8   : > { %2467 = vpow2.f32 %v1568_v61  ;;  %1585 = vadd.xlane.f32.xlu0 %v1584_v10 }
 0x7ab   : > { %v1544_v2 = vpop.xlane.xlu1 %1543 }
 0x7ac   : > { %v1558_v25 = vsub.f32 %v1502_v12, %v1544_v2 }
 0x7ae   : > { %v2468_v41 = vpop.eup %2467  ;;  %v1570_v57 = vmul.f32 1.442695, %v1558_v25 }
 0x7af   : > { %v1587_v52 = vsel %vm578_vm2, %v2468_v41, 0.0 }
 0x7b0   : > { %2469 = vpow2.f32 %v1570_v57  ;;  %1588 = vadd.xlane.f32.xlu1 %v1587_v52 }
 0x7b3   : > { %v1550_v38 = vpop.xlane.xlu1 %1549 }
 0x7b4   : > { %v1560_v20 = vsub.f32 %v1526_v36, %v1550_v38  ;;  %v1547_v36 = vpop.xlane.xlu0 %1546 }
 0x7b5   : > { %v1559_v49 = vsub.f32 %v3300_v26, %v1547_v36 }
 0x7b6   : > { %v3317_v46 = vpop.eup %2469  ;;  %v1574_v9 = vmul.f32 1.442695, %v1560_v20 }
 0x7b7   : > { %v1590_v37 = vsel %vm578_vm2, %v3317_v46, 0.0  ;;  %v1572_v1 = vmul.f32 1.442695, %v1559_v49 }
 0x7b8   : > { %2471 = vpow2.f32 %v1574_v9  ;;  %1591 = vadd.xlane.f32.xlu0 %v1590_v37 }
 0x7b9   : > { %v1553_v31 = vpop.xlane.xlu2 %1552  ;;  %2473 = vpow2.f32 %v1572_v1 }
 0x7ba   : > { %v1561_v50 = vsub.f32 %v1528_v0, %v1553_v31 }
 0x7bc   : > { %v1576_v61 = vmul.f32 1.442695, %v1561_v50 }
 0x7be   : > { %v3321_v33 = vpop.eup %2471  ;;  %2475 = vpow2.f32 %v1576_v61 }
 0x7bf   : > { %v1596_v12 = vsel %vm578_vm2, %v3321_v33, 0.0  ;;  %v2474_v2 = vpop.eup %2473 }
 0x7c0   : > { %1597 = vadd.xlane.f32.xlu2 %v1596_v12  ;;  %v1593_v52 = vsel %vm578_vm2, %v2474_v2, 0.0 }
 0x7c1   : > { %v1632_v32 = vpop.permute.xlu2 %1631 }
 0x7c2   : > { %1644 = vmatpush.bf16.msrb.mxu0 %v1632_v32 }
 0x7c4   : > { %v2476_v25 = vpop.eup %2475 }
 0x7c9   : > { %1681 = vrot.lane.b32.xlu1 %v2921_v42, %s2720_s17 }
 0x7cc   : > { %1656 = vrot.lane.b32.xlu0 %v2910_v28, %s2720_s17  ;;  %v1599_v28 = vsel %vm578_vm2, %v2476_v25, 0.0 }
 0x7ea   : > { %v1580_v10 = vpop.xlane.xlu0 %1579 }
 0x7eb   : > { %2477 = vrcp.f32 %v1580_v10 }
 0x7f1   : > { %v2478_v38 = vpop.eup %2477 }
 0x7f2   : > { %v1583_v57 = vpop.xlane.xlu1 %1582  ;;  %v1610_v42 = vmul.f32 %v2478_v38, %v2462_v19 }
 0x7f3   : > { %2479 = vrcp.f32 %v1583_v57  ;;  %1594 = vadd.xlane.f32.xlu1 %v1593_v52 }
 0x7f4   : > { %v1618_v0 = vpack.c.bf16 %v1610_v42, %v1610_v42 }
 0x7f6   : > { %1600 = vadd.xlane.f32.xlu0 %v1599_v28  ;;  %v1628_v37 = vunpack.c.l.b16 %v1618_v0 }
 0x7f9   : > { %v2480_v26 = vpop.eup %2479 }
 0x7fa   : > { %v1611_v20 = vmul.f32 %v2480_v26, %v2464_v40 }
 0x7fc   : > { %v1619_v9 = vpack.c.bf16 %v1611_v20, %v1611_v20 }
 0x7fe   : > { %v1629_v31 = vunpack.c.l.b16 %v1619_v9 }
 0x800   : > { %v1630_v12 = vpack.c.b16 %v1629_v31, %v1628_v37 }
 0x802   : > { %2137 = vmatmul.msk.bf16.vlgmr.msrb.gmra.mxu0 %vm578_vm2, %v1630_v12 }
 0x80c   : > { %1706 = vrot.lane.b32.xlu1 %v2917_v39, %s2720_s17 }
 0x814   : > { %1774 = vrot.lane.b32.xlu1 %v1770_v30, %s2721_s30 }
 0x81b   : > { %v1586_v40 = vpop.xlane.xlu0 %1585 }
 0x81c   : > { %1802 = vrot.lane.b32.xlu1 %v1798_v17, %s2722_s20 }
 0x823   : > { %v1589_v19 = vpop.xlane.xlu1 %1588 }
 0x824   : > { %1776 = vrot.lane.b32.xlu1 %v1771_v34, %s2721_s30  ;;  %2481 = vrcp.f32 %v1589_v19 }
 0x825   : > { %2483 = vrcp.f32 %v1586_v40  ;;  %v2167_v40 = vld [vmem:[#allocation8] sm:$0xff] }
 0x82a   : > { %v2482_v39 = vpop.eup %2481 }
 0x82b   : > { %v2484_v27 = vpop.eup %2483  ;;  %v1613_v29 = vmul.f32 %v2482_v39, %v2468_v41  ;;  %v1592_v44 = vpop.xlane.xlu0 %1591 }
 0x82c   : > { %1804 = vrot.lane.b32.xlu1 %v1799_v58, %s2722_s20  ;;  %v1612_v30 = vmul.f32 %v2484_v27, %v3312_v51  ;;  %2485 = vrcp.f32 %v1592_v44 }
 0x82d   : > { %v1621_v15 = vpack.c.bf16 %v1613_v29, %v1613_v29 }
 0x82e   : > { %v1620_v34 = vpack.c.bf16 %v1612_v30, %v1612_v30 }
 0x82f   : > { %v1654_v60 = vunpack.c.l.b16 %v1621_v15 }
 0x830   : > { %v1653_v17 = vunpack.c.l.b16 %v1620_v34 }
 0x832   : > { %v1655_v4 = vpack.c.b16 %v1654_v60, %v1653_v17  ;;  %v2486_v41 = vpop.eup %2485 }
 0x833   : > { %v1614_v6 = vmul.f32 %v2486_v41, %v3317_v46 }
 0x834   : > { %1778 = vrot.lane.b32.xlu1 %v1772_v7, %s2721_s30  ;;  %v1598_v7 = vpop.xlane.xlu2 %1597 }
 0x835   : > { %v1622_v32 = vpack.c.bf16 %v1614_v6, %v1614_v6 }
 0x837   : > { %v1678_v1 = vunpack.c.l.b16 %v1622_v32 }
 0x83b   : > { %v1682_v8 = vpop.permute.xlu1 %1681 }
 0x83c   : > { %1694 = vmatpush.bf16.msrb.mxu2 %v1682_v8 }
 0x83e   : > { %v1657_v3 = vpop.permute.xlu0 %1656 }
 0x83f   : > { %1669 = vmatpush.bf16.msrb.mxu1 %v1657_v3 }
 0x842   : > { %2138 = vmatmul.msk.bf16.vlgmr.msrb.gmra.mxu1 %vm578_vm2, %v1655_v4 }
 0x866   : > { %v1595_v58 = vpop.xlane.xlu1 %1594 }
 0x867   : > { %2487 = vrcp.f32 %v1595_v58 }
 0x869   : > { %v1601_v5 = vpop.xlane.xlu0 %1600 }
 0x86a   : > { %2489 = vrcp.f32 %v1601_v5 }
 0x86b   : > { %2491 = vrcp.f32 %v1598_v7 }
 0x86d   : > { %v2488_v51 = vpop.eup %2487 }
 0x86e   : > { %v1615_v36 = vmul.f32 %v2488_v51, %v2474_v2 }
 0x870   : > { %v1623_v49 = vpack.c.bf16 %v1615_v36, %v1615_v36  ;;  %v2490_v50 = vpop.eup %2489 }
 0x871   : > { %v2492_v10 = vpop.eup %2491  ;;  %v1617_v52 = vmul.f32 %v2490_v50, %v2476_v25 }
 0x872   : > { %v1679_v61 = vunpack.c.l.b16 %v1623_v49  ;;  %v1616_v38 = vmul.f32 %v2492_v10, %v3321_v33  ;;  %v2168_v33 = vld [vmem:[#allocation8 + $0x8] sm:$0xff] }
 0x873   : > { %v1625_v28 = vpack.c.bf16 %v1617_v52, %v1617_v52  ;;  %1901 = vmatpush.bf16.msra.mxu0 %v2168_v33 }
 0x874   : > { %v1680_v57 = vpack.c.b16 %v1679_v61, %v1678_v1  ;;  %v1624_v42 = vpack.c.bf16 %v1616_v38, %v1616_v38 }
 0x875   : > { %v1704_v46 = vunpack.c.l.b16 %v1625_v28 }
 0x876   : > { %2139 = vmatmul.msk.bf16.vlgmr.msrb.gmra.mxu2 %vm578_vm2, %v1680_v57  ;;  %v1703_v26 = vunpack.c.l.b16 %v1624_v42 }
 0x877   : > { %1902 = vmatpush.bf16.msra.mxu0 %v2167_v40 }
 0x878   : > { %v1705_v9 = vpack.c.b16 %v1704_v46, %v1703_v26 }
 0x87e   : > { %v1707_v0 = vpop.permute.xlu1 %1706 }
 0x87f   : > { %v1646_v20 = vpop.f32.mrf.mxu0  ;;  %1719 = vmatpush.bf16.msrb.mxu3 %v1707_v0 }
 0x880   : > { %v1726_v2 = vpack.c.bf16 %v1646_v20, %v1646_v20 }
 0x882   : > { %2140 = vmatmul.msk.bf16.vlgmr.msrb.gmra.mxu3 %vm578_vm2, %v1705_v9  ;;  %v1818_v12 = vunpack.c.l.b16 %v1726_v2 }
 0x886   : > { %v1775_v35 = vpop.permute.xlu1 %1774 }
 0x887   : > { %v1648_v37 = vpop.f32.mrf.mxu0  ;;  %v1840_v14 = vsel %vm476_vm1, %v1750_v48, %v1775_v35 }
 0x888   : > { %v1727_v31 = vpack.c.bf16 %v1648_v37, %v1648_v37 }
 0x88a   : > { %v1819_v19 = vunpack.c.l.b16 %v1727_v31 }
 0x88c   : > { %v1826_v25 = vpack.c.b16 %v1819_v19, %v1818_v12 }
 0x88e   : > { %1830 = vrot.lane.b32.xlu2 %v1826_v25, %s2723_s19  ;;  %v1803_v63 = vpop.permute.xlu1 %1802 }
 0x88f   : > { %v1851_v18 = vsel %vm578_vm2, %v1840_v14, %v1803_v63 }
 0x896   : > { %1806 = vrot.lane.b32.xlu2 %v1800_v43, %s2722_s20  ;;  %v1777_v32 = vpop.permute.xlu1 %1776 }
 0x897   : > { %v1843_v49 = vsel %vm476_vm1, %v1751_v11, %v1777_v32 }
 0x89e   : > { %1780 = vrot.lane.b32.xlu2 %v1773_v24, %s2721_s30  ;;  %v1805_v36 = vpop.permute.xlu1 %1804 }
 0x89f   : > { %v1853_v50 = vsel %vm578_vm2, %v1843_v49, %v1805_v36 }
 0x8a6   : > { %v1779_v11 = vpop.permute.xlu1 %1778 }
 0x8a7   : > { %v1846_v57 = vsel %vm476_vm1, %v1752_v23, %v1779_v11 }
 0x8bf   : > { %v1671_v39 = vpop.f32.mrf.mxu1 }
 0x8c0   : > { %v1728_v27 = vpack.c.bf16 %v1671_v39, %v1671_v39 }
 0x8c2   : > { %v1820_v44 = vunpack.c.l.b16 %v1728_v27 }
 0x8c7   : > { %v1673_v29 = vpop.f32.mrf.mxu1 }
 0x8c8   : > { %v1729_v30 = vpack.c.bf16 %v1673_v29, %v1673_v29 }
 0x8ca   : > { %v1821_v15 = vunpack.c.l.b16 %v1729_v30 }
 0x8cc   : > { %v1827_v34 = vpack.c.b16 %v1821_v15, %v1820_v44 }
 0x8ce   : > { %1832 = vrot.lane.b32.xlu0 %v1827_v34, %s2723_s19 }
 0x8e8   : > { %v1831_v24 = vpop.permute.xlu2 %1830 }
 0x8e9   : > { %v1860_v43 = vsel %vm1858_vm3, %v1851_v18, %v1831_v24 }
 0x8ea   : > { %2149 = vmatmul.msk.bf16.vlgmr.msra.gmra.mxu0 %vm403_vm0, %v1860_v43 }
 0x8f0   : > { %v1807_v10 = vpop.permute.xlu2 %1806 }
 0x8f1   : > { %v1855_v52 = vsel %vm578_vm2, %v1846_v57, %v1807_v10 }
 0x8f8   : > { %v1781_v42 = vpop.permute.xlu2 %1780 }
 0x8f9   : > { %v1696_v8 = vpop.f32.mrf.mxu2  ;;  %v1849_v21 = vsel %vm476_vm1, %v1753_v56, %v1781_v42 }
 0x8fa   : > { %v1730_v60 = vpack.c.bf16 %v1696_v8, %v1696_v8 }
 0x8fc   : > { %v1822_v4 = vunpack.c.l.b16 %v1730_v60 }
 0x901   : > { %v1698_v17 = vpop.f32.mrf.mxu2 }
 0x902   : > { %v1731_v3 = vpack.c.bf16 %v1698_v17, %v1698_v17 }
 0x904   : > { %v1823_v58 = vunpack.c.l.b16 %v1731_v3 }
 0x905   : > { %v1721_v41 = vpop.f32.mrf.mxu3 }
 0x906   : > { %v1828_v5 = vpack.c.b16 %v1823_v58, %v1822_v4  ;;  %v1732_v45 = vpack.c.bf16 %v1721_v41, %v1721_v41 }
 0x908   : > { %1834 = vrot.lane.b32.xlu1 %v1828_v5, %s2723_s19  ;;  %v1824_v6 = vunpack.c.l.b16 %v1732_v45 }
 0x90d   : > { %v1723_v47 = vpop.f32.mrf.mxu3 }
 0x90e   : > { %v1733_v48 = vpack.c.bf16 %v1723_v47, %v1723_v47 }
 0x910   : > { %v1825_v7 = vunpack.c.l.b16 %v1733_v48  ;;  %1808 = vrot.lane.b32.xlu1 %v1801_v62, %s2722_s20  ;;  %s2633_s20 = scalar_lea.hbm %s3473_s6, 128 }
 0x911   : > { %p2635_p12 = scmp.lt.s32.totalorder %s2633_s20, %s2629_s24 }
 0x912   : > { %v1829_v51 = vpack.c.b16 %v1825_v7, %v1824_v6 }
 0x913   : > { %p2636_p13 = por %p2635_p12, %p2634_p10 }
 0x914   : > { %1836 = vrot.lane.b32.xlu0 %v1829_v51, %s2723_s19 }
 0x915   : > { %p2637_p0 = pnand %p2636_p13, %p2632_p8 }
 0x940   : > { %v1833_v1 = vpop.permute.xlu0 %1832 }
 0x941   : > { %v1862_v61 = vsel %vm1858_vm3, %v1853_v50, %v1833_v1 }
 0x942   : > { %2150 = vmatmul.msk.bf16.gmra.mxu0 %vm403_vm0, %v1862_v61 }
 0x967   : > { %v1904_v16 = vpop.f32.mrf.mxu0 }
 0x968   : > { %v1905_v62 = vadd.f32 %v2364_v13, %v1904_v16 }
 0x96a   : > { %1924 = vst.msk [vmem:[%s3395_s4] sm:$0xff] %vm403_vm0, %v1905_v62 }
 0x96f   : > { %v1906_v59 = vpop.f32.mrf.mxu0 }
 0x970   : > { %v1907_v55 = vadd.f32 %v2364_v13, %v1906_v59 }
 0x972   : > { %1925 = vst.msk [vmem:[%s3395_s4 + $0x8] sm:$0xff] %vm403_vm0, %v1907_v55 }
 0x97a   : > { %v1835_v38 = vpop.permute.xlu1 %1834 }
 0x97b   : > { %v1864_v28 = vsel %vm1858_vm3, %v1855_v52, %v1835_v38 }
 0x97c   : > { %2151 = vmatmul.msk.bf16.gmra.mxu0 %vm403_vm0, %v1864_v28 }
 0x982   : > { %v1809_v46 = vpop.permute.xlu1 %1808 }
 0x983   : > { %v1857_v22 = vsel %vm578_vm2, %v1849_v21, %v1809_v46 }
 0x986   : > { %v1837_v26 = vpop.permute.xlu0 %1836 }
 0x987   : > { %v1866_v23 = vsel %vm1858_vm3, %v1857_v22, %v1837_v26 }
 0x98c   : > { %2152 = vmatmul.msk.bf16.gmra.mxu0 %vm403_vm0, %v1866_v23 }
 0x9bf   : > { %v1909_v0 = vpop.f32.mrf.mxu0 }
 0x9c0   : > { %v1910_v20 = vadd.f32 %v2364_v13, %v1909_v0 }
 0x9c2   : > { %1926 = vst.msk [vmem:[%s3395_s4 + $0x10] sm:$0xff] %vm403_vm0, %v1910_v20 }
 0x9c7   : > { %v1911_v9 = vpop.f32.mrf.mxu0 }
 0x9c8   : > { %v1912_v2 = vadd.f32 %v2364_v13, %v1911_v9 }
 0x9ca   : > { %1927 = vst.msk [vmem:[%s3395_s4 + $0x18] sm:$0xff] %vm403_vm0, %v1912_v2 }
 0x9f9   : > { %v1914_v53 = vpop.f32.mrf.mxu0 }
 0x9fa   : > { %v1915_v54 = vadd.f32 %v2364_v13, %v1914_v53 }
 0x9fc   : > { %1928 = vst.msk [vmem:[%s3395_s4 + $0x20] sm:$0xff] %vm403_vm0, %v1915_v54 }
 0xa01   : > { %v1916_v56 = vpop.f32.mrf.mxu0 }
 0xa02   : > { %v1917_v37 = vadd.f32 %v2364_v13, %v1916_v56 }
 0xa04   : > { %1929 = vst.msk [vmem:[%s3395_s4 + $0x28] sm:$0xff] %vm403_vm0, %v1917_v37 }
 0xa09   : > { %v1919_v31 = vpop.f32.mrf.mxu0 }
 0xa0a   : > { %v1920_v12 = vadd.f32 %v2364_v13, %v1919_v31 }
 0xa0c   : > { %1930 = vst.msk [vmem:[%s3395_s4 + $0x30] sm:$0xff] %vm403_vm0, %v1920_v12 }
 0xa11   : > { %v1921_v19 = vpop.f32.mrf.mxu0 }
 0xa12   : > { %v1922_v25 = vadd.f32 %v2364_v13, %v1921_v19 }
 0xa14   : > { %1931 = vst.msk [vmem:[%s3395_s4 + $0x38] sm:$0xff] %vm403_vm0, %v1922_v25 }
 0xa15   : > { %2640 = shalt.err (!%p2637_p0)
}
 0xa16   : > { %s2724_s14 = smov 128  }
 0xa17   : > { %2267 = dma.vmem_to_hbm [thread:$0]  (%p2864_p5), %s1948_s18, 1024, %s1950_s28, %s1933_s9, %s2724_s14, %s2724_s14, %s2721_s30  }
 0xa18 PF: > { %s1964_s1 = sand.u32 1, %s2683_s21   ;;  %p2284_p3 = pnand %p2070_p11, %p2809_p6 }
 0xa19   : > { %s1965_s2 = scalar_lea.sflag [#allocation4], %s1964_s1 }
 0xa1a   : > { %p2285_p7 = pneg %p2284_p3 }
 0xa1c   : > { %2678 = dma.done.wait (%p2285_p7), %s1965_s2, 1024  }
 0xa1d   : > { %2680 = vsyncadd (%p2285_p7), %s1965_s2, 4294966272  ;;  %s24_s26 = sadd.s32 1, %s2703_s26   ;;  %s3494_s15 = sld [smem:[#allocation15_spill]] }
 0xa1e   : > { %p21_p9 = scmp.ge.s32.totalorder %s24_s26, 4   ;;  %s3495_s21 = smov %s2687_s22 }
 0xa1f   : > { %s3496_s22 = smov %s2691_s23  ;;  %s3497_s23 = smov %s2873_s10 }
 0xa20   : > { %s3498_s24 = smov %s2699_s25  ;;  %23 = sbr.rel (!%p21_p9) target bundleno = 12 (0xc), region = 105 }
 0xa23   : > { %s3499_s25 = smov %s3494_s15 }
 0xa25   :  { %1971 = vsyncpa [#allocation3], 1 }
 0xa26   :  { %1973 = vsyncpa [#allocation3 + $0x1], 1 }
 0xa27   :  { %1974 = vsyncpa [#allocation6], 1 }
 0xa28   :  { %1975 = vsyncpa [#allocation9], 1 }
 0xa29   :  { %1976 = vsyncpa [#allocation4], 1 }
 0xa2a   :  { %1978 = vsyncpa [#allocation4 + $0x1], 1 }

</bundles_post_ra>
